<compile_context>
chip_gen: v5e
topology: v5e:2x2
jax: 0.10.0
libtpu: 0.0.40
codegen_flags: <defaults>
</compile_context>

<pallas_src>
import functools

import jax
import jax.numpy as jnp
from jax.experimental import pallas as pl
from jax.experimental.pallas import tpu as pltpu

LEAKY_SLOPE = 0.01
MASK_BIG = 1e8


def _mlp_layer(h, wt_ref, s_ref, t_ref):
    """1x1 conv (+ folded BN) + leaky ReLU on an (N_i, N_j, Cin) block."""
    n_i = h.shape[0]
    _, cout, cin = wt_ref.shape
    wt = jnp.broadcast_to(wt_ref[...], (n_i, cout, cin))        # leading bcast
    # Batched matmul, contracting the channel (minor/lane) axis of both sides.
    y = jnp.einsum('ijc,idc->ijd', h, wt,
                   preferred_element_type=jnp.float32)          # (N_i, N_j, Cout)
    y = y * s_ref[...] + t_ref[...]                             # folded BN + bias
    return jnp.where(y > 0, y, LEAKY_SLOPE * y)                 # F.leaky_relu


def wcompute_kernel(xi_ref, xj_ref, adj_ref, wid_ref,
                    w1_ref, s1_ref, t1_ref,
                    w2_ref, s2_ref, t2_ref,
                    w3_ref, s3_ref, t3_ref,
                    w4_ref, s4_ref, t4_ref,
                    wl_ref, bl_ref,
                    out_ref):
    xi = xi_ref[0]                        # (N, 1, Fw)  node-i rows
    xj = xj_ref[0]                        # (1, N, Fw)  node-j rows
    d = jnp.abs(xi - xj)                  # (N, N, Fw)  pairwise |x_i - x_j|

    h = _mlp_layer(d, w1_ref, s1_ref, t1_ref)
    # TODO(synk): nn.Dropout(0.3) is an inference-time identity; omitted here.
    h = _mlp_layer(h, w2_ref, s2_ref, t2_ref)
    h = _mlp_layer(h, w3_ref, s3_ref, t3_ref)
    h = _mlp_layer(h, w4_ref, s4_ref, t4_ref)                   # (N, N, nf)

    n_i = h.shape[0]
    nf = wl_ref.shape[-1]
    wl = jnp.broadcast_to(wl_ref[...], (n_i, 1, nf))
    # conv2d_last as (N_i,1,nf) x (N_i,N_j,nf) -> (N_i,1,N_j): j lands on lanes.
    logits = jnp.einsum('iqc,ijc->iqj', wl, h,
                        preferred_element_type=jnp.float32)
    logits = logits + bl_ref[...]                               # (N, 1, N)

    adjv = adj_ref[0]                     # (N, 1, N)
    widv = wid_ref[0]                     # (N, 1, N)

    z = logits * adjv - widv * MASK_BIG                         # mul adj, -W_id*1e8
    z = z - jnp.max(z, axis=-1, keepdims=True)                  # lane-axis reduce
    e = jnp.exp(z)
    p = e / jnp.sum(e, axis=-1, keepdims=True)                  # softmax over j

    out_ref[0] = p                                              # lane-dense store


def wcompute_forward(x, adj, w_id, params, n_way):
    """x: (B, N, F) float; adj, w_id: (B, N, N, 1) float. Returns (B, N, N, 2)."""
    B, N, _ = x.shape
    w_list = jnp.array(
        list(range(n_way)) + list(range(n_way + 4, n_way + 4 + 26)),
        dtype=jnp.int32)
    xw = jnp.take(x.astype(jnp.float32), w_list, axis=2)        # (B, N, Fw)
    Fw = xw.shape[-1]

    # Wrapper-side layout plumbing (free XLA reshapes) so the kernel sees
    # broadcast-ready / lane-dense operands with no in-kernel relayouts.
    xi = xw[:, :, None, :]                                      # (B, N, 1, Fw)
    xj = xw[:, None, :, :]                                      # (B, 1, N, Fw)
    adj_r = adj.astype(jnp.float32)[:, :, :, 0][:, :, None, :]  # (B, N, 1, N)
    wid_r = w_id.astype(jnp.float32)[:, :, :, 0][:, :, None, :] # (B, N, 1, N)

    def prep_w(w):      # (Cin, Cout) -> (1, Cout, Cin): contract the lane axis
        return jnp.transpose(w)[None]

    weight_args = [
        prep_w(params["w1"]), params["s1"][None], params["t1"][None],
        prep_w(params["w2"]), params["s2"][None], params["t2"][None],
        prep_w(params["w3"]), params["s3"][None], params["t3"][None],
        prep_w(params["w4"]), params["s4"][None], params["t4"][None],
        prep_w(params["wl"]),                                   # (1, 1, nf)
        params["bl"][None],                                     # (1, 1, 1)
    ]
    weight_specs = [pl.BlockSpec(w.shape, lambda b: (0, 0, 0))
                    for w in weight_args]

    grid_spec = pltpu.PrefetchScalarGridSpec(
        num_scalar_prefetch=0,
        grid=(B,),
        in_specs=[
            pl.BlockSpec((1, N, 1, Fw), lambda b: (b, 0, 0, 0)),   # x (i rows)
            pl.BlockSpec((1, 1, N, Fw), lambda b: (b, 0, 0, 0)),   # x (j rows)
            pl.BlockSpec((1, N, 1, N), lambda b: (b, 0, 0, 0)),    # adj[b]
            pl.BlockSpec((1, N, 1, N), lambda b: (b, 0, 0, 0)),    # W_id[b]
        ] + weight_specs,
        out_specs=pl.BlockSpec((1, N, 1, N), lambda b: (b, 0, 0, 0)),
    )

    p = pl.pallas_call(
        wcompute_kernel,
        out_shape=jax.ShapeDtypeStruct((B, N, 1, N), jnp.float32),
        grid_spec=grid_spec,
        compiler_params=pltpu.CompilerParams(
            # Batch axis is fully independent -> megacore-shardable on v7x;
            # no-op on single-TC v5e/v6e.
            dimension_semantics=("parallel",)),
    )(xi, xj, adj_r, wid_r, *weight_args)

    p = p[:, :, 0, :, None]                                     # (B, N, N, 1)
    # operator == 'cat': concat with W_id in the wrapper (keeps the kernel's
    # output lane-dense and avoids copying W_id through the kernel).
    return jnp.concatenate([w_id.astype(jnp.float32), p], axis=3)


# ----------------------------- parameter setup ------------------------------

def _conv_params(key, cin, cout):
    kw, kb = jax.random.split(key)
    w = jax.random.normal(kw, (cin, cout), jnp.float32) / jnp.sqrt(
        jnp.asarray(cin, jnp.float32))
    b = 0.1 * jax.random.normal(kb, (cout,), jnp.float32)
    return w, b


def _bn_params(cout, idx):
    r = jnp.arange(cout, dtype=jnp.float32)
    gamma = 1.0 + 0.1 * jnp.cos(r + idx)
    beta = 0.05 * jnp.sin(r - idx)
    mean = 0.01 * r
    var = 1.0 + 0.1 * jnp.mod(r, 3.0)
    return gamma, beta, mean, var


def _fold(w, b, gamma, beta, mean, var, eps=1e-5):
    s = gamma / jnp.sqrt(var + eps)
    t = (b - mean) * s + beta
    return w, s.reshape(1, -1), t.reshape(1, -1)


def make_params(key, n_way, nf, ratio=(2, 2, 1, 1)):
    Fw = 26 + n_way
    dims = [Fw, int(nf * ratio[0]), int(nf * ratio[1]), nf * ratio[2], nf * ratio[3]]
    keys = jax.random.split(key, 5)
    params = {}
    for li in range(4):
        w, b = _conv_params(keys[li], dims[li], dims[li + 1])
        g, be, m, v = _bn_params(dims[li + 1], float(li))
        wf, s, t = _fold(w, b, g, be, m, v)
        params[f"w{li + 1}"] = wf
        params[f"s{li + 1}"] = s
        params[f"t{li + 1}"] = t
    wl, bl = _conv_params(keys[4], dims[4], 1)
    params["wl"] = wl
    params["bl"] = bl.reshape(1, 1)
    return params


# ------------------------------ pure-JAX reference ---------------------------

def reference_forward(x, adj, w_id, params, n_way):
    w_list = jnp.array(
        list(range(n_way)) + list(range(n_way + 4, n_way + 4 + 26)),
        dtype=jnp.int32)
    xw = jnp.take(x.astype(jnp.float32), w_list, axis=2)
    d = jnp.abs(xw[:, :, None, :] - xw[:, None, :, :])          # (B, N, N, Fw)
    h = d
    dot = functools.partial(jnp.dot, precision=jax.lax.Precision.HIGHEST)
    for li in range(1, 5):
        h = dot(h, params[f"w{li}"]) * params[f"s{li}"] + params[f"t{li}"]
        h = jnp.where(h > 0, h, LEAKY_SLOPE * h)
    logits = dot(h, params["wl"]) + params["bl"]                 # (B, N, N, 1)
    z = logits * adj - w_id * MASK_BIG
    z = z - jnp.max(z, axis=2, keepdims=True)
    e = jnp.exp(z)
    p = e / jnp.sum(e, axis=2, keepdims=True)                    # softmax over j
    return jnp.concatenate([w_id, p], axis=3)                    # operator == 'cat'


# ----------------------------------- main ------------------------------------

if __name__ == "__main__":
    n_way = 5          # args.test_N_way  -> Fw = 26 + 5 = 31
    nf = 8
    B, N, F = 2, 6, 40  # batch, nodes, raw feature dim (>= n_way + 30)

    root = jax.random.PRNGKey(0)
    kx, kadj, kp = jax.random.split(root, 3)

    x = jax.random.normal(kx, (B, N, F), jnp.float32)
    adj = jax.random.uniform(kadj, (B, N, N, 1), jnp.float32,
                             minval=0.5, maxval=1.0)
    w_id = jnp.tile(jnp.eye(N, dtype=jnp.float32)[None, :, :, None], (B, 1, 1, 1))

    params = make_params(kp, n_way, nf)

    out = wcompute_forward(x, adj, w_id, params, n_way)
    out = jax.block_until_ready(out)

    ref = jax.block_until_ready(reference_forward(x, adj, w_id, params, n_way))

    assert out.shape == (B, N, N, 2), out.shape
    assert jnp.allclose(out, ref, rtol=1e-3, atol=2e-3), (
        float(jnp.max(jnp.abs(out - ref))))

    print("KERNEL_OK")
</pallas_src>

<mosaic_0001>
module attributes {stable_mosaic.version = 11 : i64} {
  func.func @wcompute_kernel(%arg0: i32, %arg1: memref<1x6x1x31xf32, #tpu.memory_space<vmem>>, %arg2: memref<1x1x6x31xf32, #tpu.memory_space<vmem>>, %arg3: memref<1x6x1x6xf32, #tpu.memory_space<vmem>>, %arg4: memref<1x6x1x6xf32, #tpu.memory_space<vmem>>, %arg5: memref<1x16x31xf32, #tpu.memory_space<vmem>>, %arg6: memref<1x1x16xf32, #tpu.memory_space<vmem>>, %arg7: memref<1x1x16xf32, #tpu.memory_space<vmem>>, %arg8: memref<1x16x16xf32, #tpu.memory_space<vmem>>, %arg9: memref<1x1x16xf32, #tpu.memory_space<vmem>>, %arg10: memref<1x1x16xf32, #tpu.memory_space<vmem>>, %arg11: memref<1x8x16xf32, #tpu.memory_space<vmem>>, %arg12: memref<1x1x8xf32, #tpu.memory_space<vmem>>, %arg13: memref<1x1x8xf32, #tpu.memory_space<vmem>>, %arg14: memref<1x8x8xf32, #tpu.memory_space<vmem>>, %arg15: memref<1x1x8xf32, #tpu.memory_space<vmem>>, %arg16: memref<1x1x8xf32, #tpu.memory_space<vmem>>, %arg17: memref<1x1x8xf32, #tpu.memory_space<vmem>>, %arg18: memref<1x1x1xf32, #tpu.memory_space<vmem>>, %arg19: memref<1x6x1x6xf32, #tpu.memory_space<vmem>>) attributes {dimension_semantics = [#tpu.dimension_semantics<parallel>], iteration_bounds = array<i64: 2>, scalar_prefetch = 0 : i64, scratch_operands = 0 : i64, tpu.core_type = #tpu.core_type<tc>, window_params = [{transform_indices = @transform_0, window_bounds = array<i64: 1, 6, 1, 31>}, {transform_indices = @transform_1, window_bounds = array<i64: 1, 1, 6, 31>}, {transform_indices = @transform_2, window_bounds = array<i64: 1, 6, 1, 6>}, {transform_indices = @transform_3, window_bounds = array<i64: 1, 6, 1, 6>}, {pipeline_mode = #tpu.pipeline_mode<synchronous>, transform_indices = @transform_4, window_bounds = array<i64: 1, 16, 31>}, {pipeline_mode = #tpu.pipeline_mode<synchronous>, transform_indices = @transform_5, window_bounds = array<i64: 1, 1, 16>}, {pipeline_mode = #tpu.pipeline_mode<synchronous>, transform_indices = @transform_6, window_bounds = array<i64: 1, 1, 16>}, {pipeline_mode = #tpu.pipeline_mode<synchronous>, transform_indices = @transform_7, window_bounds = array<i64: 1, 16, 16>}, {pipeline_mode = #tpu.pipeline_mode<synchronous>, transform_indices = @transform_8, window_bounds = array<i64: 1, 1, 16>}, {pipeline_mode = #tpu.pipeline_mode<synchronous>, transform_indices = @transform_9, window_bounds = array<i64: 1, 1, 16>}, {pipeline_mode = #tpu.pipeline_mode<synchronous>, transform_indices = @transform_10, window_bounds = array<i64: 1, 8, 16>}, {pipeline_mode = #tpu.pipeline_mode<synchronous>, transform_indices = @transform_11, window_bounds = array<i64: 1, 1, 8>}, {pipeline_mode = #tpu.pipeline_mode<synchronous>, transform_indices = @transform_12, window_bounds = array<i64: 1, 1, 8>}, {pipeline_mode = #tpu.pipeline_mode<synchronous>, transform_indices = @transform_13, window_bounds = array<i64: 1, 8, 8>}, {pipeline_mode = #tpu.pipeline_mode<synchronous>, transform_indices = @transform_14, window_bounds = array<i64: 1, 1, 8>}, {pipeline_mode = #tpu.pipeline_mode<synchronous>, transform_indices = @transform_15, window_bounds = array<i64: 1, 1, 8>}, {pipeline_mode = #tpu.pipeline_mode<synchronous>, transform_indices = @transform_16, window_bounds = array<i64: 1, 1, 8>}, {pipeline_mode = #tpu.pipeline_mode<synchronous>, transform_indices = @transform_17, window_bounds = array<i64: 1, 1, 1>}, {transform_indices = @transform_18, window_bounds = array<i64: 1, 6, 1, 6>}]} {
    %c0 = arith.constant 0 : index
    %c0_0 = arith.constant 0 : index
    %c0_1 = arith.constant 0 : index
    %c0_2 = arith.constant 0 : index
    %0 = vector.load %arg1[%c0, %c0_0, %c0_1, %c0_2] : memref<1x6x1x31xf32, #tpu.memory_space<vmem>>, vector<1x6x1x31xf32>
    %1 = vector.shape_cast %0 : vector<1x6x1x31xf32> to vector<6x1x31xf32>
    %c0_3 = arith.constant 0 : index
    %c0_4 = arith.constant 0 : index
    %c0_5 = arith.constant 0 : index
    %c0_6 = arith.constant 0 : index
    %2 = vector.load %arg2[%c0_3, %c0_4, %c0_5, %c0_6] : memref<1x1x6x31xf32, #tpu.memory_space<vmem>>, vector<1x1x6x31xf32>
    %3 = vector.shape_cast %2 : vector<1x1x6x31xf32> to vector<1x6x31xf32>
    %4 = vector.broadcast %1 : vector<6x1x31xf32> to vector<6x6x31xf32>
    %5 = vector.broadcast %3 : vector<1x6x31xf32> to vector<6x6x31xf32>
    %6 = arith.subf %4, %5 : vector<6x6x31xf32>
    %7 = math.absf %6 : vector<6x6x31xf32>
    %c0_7 = arith.constant 0 : index
    %c0_8 = arith.constant 0 : index
    %c0_9 = arith.constant 0 : index
    %8 = vector.load %arg5[%c0_7, %c0_8, %c0_9] : memref<1x16x31xf32, #tpu.memory_space<vmem>>, vector<1x16x31xf32>
    %9 = vector.shape_cast %8 : vector<1x16x31xf32> to vector<1x16x31xf32>
    %10 = vector.broadcast %9 : vector<1x16x31xf32> to vector<6x16x31xf32>
    "tpu.trace_start"() <{level = 10 : i32, message = "ijc,idc->ijd"}> : () -> ()
    %cst = arith.constant dense<0.000000e+00> : vector<6x6x16xf32>
    %11 = tpu.matmul %7, %10, %cst {dimension_numbers = #tpu.dot_dimension_numbers<[2], [2], [1], [1], [0, 0, 0, 1, 1, 1], [0], [0]>} : vector<6x6x31xf32>, vector<6x16x31xf32>, vector<6x6x16xf32> -> vector<6x6x16xf32>
    "tpu.trace_stop"() : () -> ()
    %c0_10 = arith.constant 0 : index
    %c0_11 = arith.constant 0 : index
    %c0_12 = arith.constant 0 : index
    %12 = vector.load %arg6[%c0_10, %c0_11, %c0_12] : memref<1x1x16xf32, #tpu.memory_space<vmem>>, vector<1x1x16xf32>
    %13 = vector.broadcast %12 : vector<1x1x16xf32> to vector<6x6x16xf32>
    %14 = arith.mulf %11, %13 : vector<6x6x16xf32>
    %c0_13 = arith.constant 0 : index
    %c0_14 = arith.constant 0 : index
    %c0_15 = arith.constant 0 : index
    %15 = vector.load %arg7[%c0_13, %c0_14, %c0_15] : memref<1x1x16xf32, #tpu.memory_space<vmem>>, vector<1x1x16xf32>
    %16 = vector.broadcast %15 : vector<1x1x16xf32> to vector<6x6x16xf32>
    %17 = arith.addf %14, %16 : vector<6x6x16xf32>
    %cst_16 = arith.constant 0.000000e+00 : f32
    %18 = vector.broadcast %cst_16 : f32 to vector<6x6x16xf32>
    %19 = arith.cmpf ogt, %17, %18 : vector<6x6x16xf32>
    %cst_17 = arith.constant 0.00999999977 : f32
    %20 = vector.broadcast %cst_17 : f32 to vector<6x6x16xf32>
    %21 = arith.mulf %20, %17 : vector<6x6x16xf32>
    %22 = arith.select %19, %17, %21 : vector<6x6x16xi1>, vector<6x6x16xf32>
    %c0_18 = arith.constant 0 : index
    %c0_19 = arith.constant 0 : index
    %c0_20 = arith.constant 0 : index
    %23 = vector.load %arg8[%c0_18, %c0_19, %c0_20] : memref<1x16x16xf32, #tpu.memory_space<vmem>>, vector<1x16x16xf32>
    %24 = vector.shape_cast %23 : vector<1x16x16xf32> to vector<1x16x16xf32>
    %25 = vector.broadcast %24 : vector<1x16x16xf32> to vector<6x16x16xf32>
    "tpu.trace_start"() <{level = 10 : i32, message = "ijc,idc->ijd"}> : () -> ()
    %cst_21 = arith.constant dense<0.000000e+00> : vector<6x6x16xf32>
    %26 = tpu.matmul %22, %25, %cst_21 {dimension_numbers = #tpu.dot_dimension_numbers<[2], [2], [1], [1], [0, 0, 0, 1, 1, 1], [0], [0]>} : vector<6x6x16xf32>, vector<6x16x16xf32>, vector<6x6x16xf32> -> vector<6x6x16xf32>
    "tpu.trace_stop"() : () -> ()
    %c0_22 = arith.constant 0 : index
    %c0_23 = arith.constant 0 : index
    %c0_24 = arith.constant 0 : index
    %27 = vector.load %arg9[%c0_22, %c0_23, %c0_24] : memref<1x1x16xf32, #tpu.memory_space<vmem>>, vector<1x1x16xf32>
    %28 = vector.broadcast %27 : vector<1x1x16xf32> to vector<6x6x16xf32>
    %29 = arith.mulf %26, %28 : vector<6x6x16xf32>
    %c0_25 = arith.constant 0 : index
    %c0_26 = arith.constant 0 : index
    %c0_27 = arith.constant 0 : index
    %30 = vector.load %arg10[%c0_25, %c0_26, %c0_27] : memref<1x1x16xf32, #tpu.memory_space<vmem>>, vector<1x1x16xf32>
    %31 = vector.broadcast %30 : vector<1x1x16xf32> to vector<6x6x16xf32>
    %32 = arith.addf %29, %31 : vector<6x6x16xf32>
    %cst_28 = arith.constant 0.000000e+00 : f32
    %33 = vector.broadcast %cst_28 : f32 to vector<6x6x16xf32>
    %34 = arith.cmpf ogt, %32, %33 : vector<6x6x16xf32>
    %cst_29 = arith.constant 0.00999999977 : f32
    %35 = vector.broadcast %cst_29 : f32 to vector<6x6x16xf32>
    %36 = arith.mulf %35, %32 : vector<6x6x16xf32>
    %37 = arith.select %34, %32, %36 : vector<6x6x16xi1>, vector<6x6x16xf32>
    %c0_30 = arith.constant 0 : index
    %c0_31 = arith.constant 0 : index
    %c0_32 = arith.constant 0 : index
    %38 = vector.load %arg11[%c0_30, %c0_31, %c0_32] : memref<1x8x16xf32, #tpu.memory_space<vmem>>, vector<1x8x16xf32>
    %39 = vector.shape_cast %38 : vector<1x8x16xf32> to vector<1x8x16xf32>
    %40 = vector.broadcast %39 : vector<1x8x16xf32> to vector<6x8x16xf32>
    "tpu.trace_start"() <{level = 10 : i32, message = "ijc,idc->ijd"}> : () -> ()
    %cst_33 = arith.constant dense<0.000000e+00> : vector<6x6x8xf32>
    %41 = tpu.matmul %37, %40, %cst_33 {dimension_numbers = #tpu.dot_dimension_numbers<[2], [2], [1], [1], [0, 0, 0, 1, 1, 1], [0], [0]>} : vector<6x6x16xf32>, vector<6x8x16xf32>, vector<6x6x8xf32> -> vector<6x6x8xf32>
    "tpu.trace_stop"() : () -> ()
    %c0_34 = arith.constant 0 : index
    %c0_35 = arith.constant 0 : index
    %c0_36 = arith.constant 0 : index
    %42 = vector.load %arg12[%c0_34, %c0_35, %c0_36] : memref<1x1x8xf32, #tpu.memory_space<vmem>>, vector<1x1x8xf32>
    %43 = vector.broadcast %42 : vector<1x1x8xf32> to vector<6x6x8xf32>
    %44 = arith.mulf %41, %43 : vector<6x6x8xf32>
    %c0_37 = arith.constant 0 : index
    %c0_38 = arith.constant 0 : index
    %c0_39 = arith.constant 0 : index
    %45 = vector.load %arg13[%c0_37, %c0_38, %c0_39] : memref<1x1x8xf32, #tpu.memory_space<vmem>>, vector<1x1x8xf32>
    %46 = vector.broadcast %45 : vector<1x1x8xf32> to vector<6x6x8xf32>
    %47 = arith.addf %44, %46 : vector<6x6x8xf32>
    %cst_40 = arith.constant 0.000000e+00 : f32
    %48 = vector.broadcast %cst_40 : f32 to vector<6x6x8xf32>
    %49 = arith.cmpf ogt, %47, %48 : vector<6x6x8xf32>
    %cst_41 = arith.constant 0.00999999977 : f32
    %50 = vector.broadcast %cst_41 : f32 to vector<6x6x8xf32>
    %51 = arith.mulf %50, %47 : vector<6x6x8xf32>
    %52 = arith.select %49, %47, %51 : vector<6x6x8xi1>, vector<6x6x8xf32>
    %c0_42 = arith.constant 0 : index
    %c0_43 = arith.constant 0 : index
    %c0_44 = arith.constant 0 : index
    %53 = vector.load %arg14[%c0_42, %c0_43, %c0_44] : memref<1x8x8xf32, #tpu.memory_space<vmem>>, vector<1x8x8xf32>
    %54 = vector.shape_cast %53 : vector<1x8x8xf32> to vector<1x8x8xf32>
    %55 = vector.broadcast %54 : vector<1x8x8xf32> to vector<6x8x8xf32>
    "tpu.trace_start"() <{level = 10 : i32, message = "ijc,idc->ijd"}> : () -> ()
    %cst_45 = arith.constant dense<0.000000e+00> : vector<6x6x8xf32>
    %56 = tpu.matmul %52, %55, %cst_45 {dimension_numbers = #tpu.dot_dimension_numbers<[2], [2], [1], [1], [0, 0, 0, 1, 1, 1], [0], [0]>} : vector<6x6x8xf32>, vector<6x8x8xf32>, vector<6x6x8xf32> -> vector<6x6x8xf32>
    "tpu.trace_stop"() : () -> ()
    %c0_46 = arith.constant 0 : index
    %c0_47 = arith.constant 0 : index
    %c0_48 = arith.constant 0 : index
    %57 = vector.load %arg15[%c0_46, %c0_47, %c0_48] : memref<1x1x8xf32, #tpu.memory_space<vmem>>, vector<1x1x8xf32>
    %58 = vector.broadcast %57 : vector<1x1x8xf32> to vector<6x6x8xf32>
    %59 = arith.mulf %56, %58 : vector<6x6x8xf32>
    %c0_49 = arith.constant 0 : index
    %c0_50 = arith.constant 0 : index
    %c0_51 = arith.constant 0 : index
    %60 = vector.load %arg16[%c0_49, %c0_50, %c0_51] : memref<1x1x8xf32, #tpu.memory_space<vmem>>, vector<1x1x8xf32>
    %61 = vector.broadcast %60 : vector<1x1x8xf32> to vector<6x6x8xf32>
    %62 = arith.addf %59, %61 : vector<6x6x8xf32>
    %cst_52 = arith.constant 0.000000e+00 : f32
    %63 = vector.broadcast %cst_52 : f32 to vector<6x6x8xf32>
    %64 = arith.cmpf ogt, %62, %63 : vector<6x6x8xf32>
    %cst_53 = arith.constant 0.00999999977 : f32
    %65 = vector.broadcast %cst_53 : f32 to vector<6x6x8xf32>
    %66 = arith.mulf %65, %62 : vector<6x6x8xf32>
    %67 = arith.select %64, %62, %66 : vector<6x6x8xi1>, vector<6x6x8xf32>
    %c0_54 = arith.constant 0 : index
    %c0_55 = arith.constant 0 : index
    %c0_56 = arith.constant 0 : index
    %68 = vector.load %arg17[%c0_54, %c0_55, %c0_56] : memref<1x1x8xf32, #tpu.memory_space<vmem>>, vector<1x1x8xf32>
    %69 = vector.shape_cast %68 : vector<1x1x8xf32> to vector<1x1x8xf32>
    %70 = vector.broadcast %69 : vector<1x1x8xf32> to vector<6x1x8xf32>
    "tpu.trace_start"() <{level = 10 : i32, message = "iqc,ijc->iqj"}> : () -> ()
    %cst_57 = arith.constant dense<0.000000e+00> : vector<6x1x6xf32>
    %71 = tpu.matmul %70, %67, %cst_57 {dimension_numbers = #tpu.dot_dimension_numbers<[2], [2], [1], [1], [0, 0, 0, 1, 1, 1], [0], [0]>} : vector<6x1x8xf32>, vector<6x6x8xf32>, vector<6x1x6xf32> -> vector<6x1x6xf32>
    "tpu.trace_stop"() : () -> ()
    %c0_58 = arith.constant 0 : index
    %c0_59 = arith.constant 0 : index
    %c0_60 = arith.constant 0 : index
    %72 = vector.load %arg18[%c0_58, %c0_59, %c0_60] : memref<1x1x1xf32, #tpu.memory_space<vmem>>, vector<1x1x1xf32>
    %73 = vector.broadcast %72 : vector<1x1x1xf32> to vector<6x1x6xf32>
    %74 = arith.addf %71, %73 : vector<6x1x6xf32>
    %c0_61 = arith.constant 0 : index
    %c0_62 = arith.constant 0 : index
    %c0_63 = arith.constant 0 : index
    %c0_64 = arith.constant 0 : index
    %75 = vector.load %arg3[%c0_61, %c0_62, %c0_63, %c0_64] : memref<1x6x1x6xf32, #tpu.memory_space<vmem>>, vector<1x6x1x6xf32>
    %76 = vector.shape_cast %75 : vector<1x6x1x6xf32> to vector<6x1x6xf32>
    %c0_65 = arith.constant 0 : index
    %c0_66 = arith.constant 0 : index
    %c0_67 = arith.constant 0 : index
    %c0_68 = arith.constant 0 : index
    %77 = vector.load %arg4[%c0_65, %c0_66, %c0_67, %c0_68] : memref<1x6x1x6xf32, #tpu.memory_space<vmem>>, vector<1x6x1x6xf32>
    %78 = vector.shape_cast %77 : vector<1x6x1x6xf32> to vector<6x1x6xf32>
    %79 = arith.mulf %74, %76 : vector<6x1x6xf32>
    %cst_69 = arith.constant 1.000000e+08 : f32
    %80 = vector.broadcast %cst_69 : f32 to vector<6x1x6xf32>
    %81 = arith.mulf %78, %80 : vector<6x1x6xf32>
    %82 = arith.subf %79, %81 : vector<6x1x6xf32>
    %cst_70 = arith.constant dense<0xFF800000> : vector<6x1xf32>
    %83 = vector.multi_reduction <maximumf>, %82, %cst_70 [2] : vector<6x1x6xf32> to vector<6x1xf32>
    %84 = vector.shape_cast %83 : vector<6x1xf32> to vector<6x1x1xf32>
    %85 = vector.broadcast %84 : vector<6x1x1xf32> to vector<6x1x6xf32>
    %86 = arith.subf %82, %85 : vector<6x1x6xf32>
    %87 = math.exp %86 : vector<6x1x6xf32>
    %cst_71 = arith.constant dense<0.000000e+00> : vector<6x1xf32>
    %88 = vector.multi_reduction <add>, %87, %cst_71 [2] : vector<6x1x6xf32> to vector<6x1xf32>
    %89 = vector.shape_cast %88 : vector<6x1xf32> to vector<6x1x1xf32>
    %90 = vector.broadcast %89 : vector<6x1x1xf32> to vector<6x1x6xf32>
    %91 = arith.divf %87, %90 : vector<6x1x6xf32>
    %c0_72 = arith.constant 0 : index
    %c0_73 = arith.constant 0 : index
    %c0_74 = arith.constant 0 : index
    %c0_75 = arith.constant 0 : index
    %92 = vector.load %arg19[%c0_72, %c0_73, %c0_74, %c0_75] : memref<1x6x1x6xf32, #tpu.memory_space<vmem>>, vector<1x6x1x6xf32>
    %93 = vector.shape_cast %92 : vector<1x6x1x6xf32> to vector<6x1x6xf32>
    %94 = vector.shape_cast %91 : vector<6x1x6xf32> to vector<1x6x1x6xf32>
    tpu.vector_store %arg19[%c0_72, %c0_73, %c0_74, %c0_75], %94 {strides = array<i32>} : memref<1x6x1x6xf32, #tpu.memory_space<vmem>>, vector<1x6x1x6xf32>,
    return
  }
  func.func @transform_0(%arg0: i32) -> (i32, i32, i32, i32) {
    %c0_i32 = arith.constant 0 : i32
    %c0_i32_0 = arith.constant 0 : i32
    %c0_i32_1 = arith.constant 0 : i32
    %c0_i32_2 = arith.constant 0 : i32
    return %arg0, %c0_i32, %c0_i32_0, %c0_i32_1 : i32, i32, i32, i32
  }
  func.func @transform_1(%arg0: i32) -> (i32, i32, i32, i32) {
    %c0_i32 = arith.constant 0 : i32
    %c0_i32_0 = arith.constant 0 : i32
    %c0_i32_1 = arith.constant 0 : i32
    %c0_i32_2 = arith.constant 0 : i32
    return %arg0, %c0_i32, %c0_i32_0, %c0_i32_1 : i32, i32, i32, i32
  }
  func.func @transform_2(%arg0: i32) -> (i32, i32, i32, i32) {
    %c0_i32 = arith.constant 0 : i32
    %c0_i32_0 = arith.constant 0 : i32
    %c0_i32_1 = arith.constant 0 : i32
    %c0_i32_2 = arith.constant 0 : i32
    return %arg0, %c0_i32, %c0_i32_0, %c0_i32_1 : i32, i32, i32, i32
  }
  func.func @transform_3(%arg0: i32) -> (i32, i32, i32, i32) {
    %c0_i32 = arith.constant 0 : i32
    %c0_i32_0 = arith.constant 0 : i32
    %c0_i32_1 = arith.constant 0 : i32
    %c0_i32_2 = arith.constant 0 : i32
    return %arg0, %c0_i32, %c0_i32_0, %c0_i32_1 : i32, i32, i32, i32
  }
  func.func @transform_4(%arg0: i32) -> (i32, i32, i32) {
    %c0_i32 = arith.constant 0 : i32
    %c0_i32_0 = arith.constant 0 : i32
    %c0_i32_1 = arith.constant 0 : i32
    %c0_i32_2 = arith.constant 0 : i32
    return %c0_i32, %c0_i32_0, %c0_i32_1 : i32, i32, i32
  }
  func.func @transform_5(%arg0: i32) -> (i32, i32, i32) {
    %c0_i32 = arith.constant 0 : i32
    %c0_i32_0 = arith.constant 0 : i32
    %c0_i32_1 = arith.constant 0 : i32
    %c0_i32_2 = arith.constant 0 : i32
    return %c0_i32, %c0_i32_0, %c0_i32_1 : i32, i32, i32
  }
  func.func @transform_6(%arg0: i32) -> (i32, i32, i32) {
    %c0_i32 = arith.constant 0 : i32
    %c0_i32_0 = arith.constant 0 : i32
    %c0_i32_1 = arith.constant 0 : i32
    %c0_i32_2 = arith.constant 0 : i32
    return %c0_i32, %c0_i32_0, %c0_i32_1 : i32, i32, i32
  }
  func.func @transform_7(%arg0: i32) -> (i32, i32, i32) {
    %c0_i32 = arith.constant 0 : i32
    %c0_i32_0 = arith.constant 0 : i32
    %c0_i32_1 = arith.constant 0 : i32
    %c0_i32_2 = arith.constant 0 : i32
    return %c0_i32, %c0_i32_0, %c0_i32_1 : i32, i32, i32
  }
  func.func @transform_8(%arg0: i32) -> (i32, i32, i32) {
    %c0_i32 = arith.constant 0 : i32
    %c0_i32_0 = arith.constant 0 : i32
    %c0_i32_1 = arith.constant 0 : i32
    %c0_i32_2 = arith.constant 0 : i32
    return %c0_i32, %c0_i32_0, %c0_i32_1 : i32, i32, i32
  }
  func.func @transform_9(%arg0: i32) -> (i32, i32, i32) {
    %c0_i32 = arith.constant 0 : i32
    %c0_i32_0 = arith.constant 0 : i32
    %c0_i32_1 = arith.constant 0 : i32
    %c0_i32_2 = arith.constant 0 : i32
    return %c0_i32, %c0_i32_0, %c0_i32_1 : i32, i32, i32
  }
  func.func @transform_10(%arg0: i32) -> (i32, i32, i32) {
    %c0_i32 = arith.constant 0 : i32
    %c0_i32_0 = arith.constant 0 : i32
    %c0_i32_1 = arith.constant 0 : i32
    %c0_i32_2 = arith.constant 0 : i32
    return %c0_i32, %c0_i32_0, %c0_i32_1 : i32, i32, i32
  }
  func.func @transform_11(%arg0: i32) -> (i32, i32, i32) {
    %c0_i32 = arith.constant 0 : i32
    %c0_i32_0 = arith.constant 0 : i32
    %c0_i32_1 = arith.constant 0 : i32
    %c0_i32_2 = arith.constant 0 : i32
    return %c0_i32, %c0_i32_0, %c0_i32_1 : i32, i32, i32
  }
  func.func @transform_12(%arg0: i32) -> (i32, i32, i32) {
    %c0_i32 = arith.constant 0 : i32
    %c0_i32_0 = arith.constant 0 : i32
    %c0_i32_1 = arith.constant 0 : i32
    %c0_i32_2 = arith.constant 0 : i32
    return %c0_i32, %c0_i32_0, %c0_i32_1 : i32, i32, i32
  }
  func.func @transform_13(%arg0: i32) -> (i32, i32, i32) {
    %c0_i32 = arith.constant 0 : i32
    %c0_i32_0 = arith.constant 0 : i32
    %c0_i32_1 = arith.constant 0 : i32
    %c0_i32_2 = arith.constant 0 : i32
    return %c0_i32, %c0_i32_0, %c0_i32_1 : i32, i32, i32
  }
  func.func @transform_14(%arg0: i32) -> (i32, i32, i32) {
    %c0_i32 = arith.constant 0 : i32
    %c0_i32_0 = arith.constant 0 : i32
    %c0_i32_1 = arith.constant 0 : i32
    %c0_i32_2 = arith.constant 0 : i32
    return %c0_i32, %c0_i32_0, %c0_i32_1 : i32, i32, i32
  }
  func.func @transform_15(%arg0: i32) -> (i32, i32, i32) {
    %c0_i32 = arith.constant 0 : i32
    %c0_i32_0 = arith.constant 0 : i32
    %c0_i32_1 = arith.constant 0 : i32
    %c0_i32_2 = arith.constant 0 : i32
    return %c0_i32, %c0_i32_0, %c0_i32_1 : i32, i32, i32
  }
  func.func @transform_16(%arg0: i32) -> (i32, i32, i32) {
    %c0_i32 = arith.constant 0 : i32
    %c0_i32_0 = arith.constant 0 : i32
    %c0_i32_1 = arith.constant 0 : i32
    %c0_i32_2 = arith.constant 0 : i32
    return %c0_i32, %c0_i32_0, %c0_i32_1 : i32, i32, i32
  }
  func.func @transform_17(%arg0: i32) -> (i32, i32, i32) {
    %c0_i32 = arith.constant 0 : i32
    %c0_i32_0 = arith.constant 0 : i32
    %c0_i32_1 = arith.constant 0 : i32
    %c0_i32_2 = arith.constant 0 : i32
    return %c0_i32, %c0_i32_0, %c0_i32_1 : i32, i32, i32
  }
  func.func @transform_18(%arg0: i32) -> (i32, i32, i32, i32) {
    %c0_i32 = arith.constant 0 : i32
    %c0_i32_0 = arith.constant 0 : i32
    %c0_i32_1 = arith.constant 0 : i32
    %c0_i32_2 = arith.constant 0 : i32
    return %arg0, %c0_i32, %c0_i32_0, %c0_i32_1 : i32, i32, i32, i32
  }
}

</mosaic_0001>

<bundles_post_ra>
// kernel: tpu_custom_call.1
= control target key start
LH: loop header
LB: loop body
LE: loop exit
PB: predicated region body
PF: predicated region fallthrough
CT: control target
= control target key end

     0   :  { %s3246_s0 = inlined_call_operand.hbm [shape: f32[2,6,1,31], index: 0, kind: input, shape index: {}]   ;;  %s3247_s1 = inlined_call_operand.vmem [shape: f32[2,1,6,31], index: 1, kind: input, shape index: {}]   ;;  %s3248_s2 = inlined_call_operand.hbm [shape: f32[2,6,1,6], index: 2, kind: input, shape index: {}]   ;;  %s3249_s3 = inlined_call_operand.hbm [shape: f32[2,6,1,6], index: 3, kind: input, shape index: {}]   ;;  %s3250_s4 = inlined_call_operand.vmem [shape: f32[1,16,31], index: 4, kind: input, shape index: {}]   ;;  %s3251_s5 = inlined_call_operand.hbm [shape: f32[1,1,16], index: 5, kind: input, shape index: {}]   ;;  %s3252_s6 = inlined_call_operand.hbm [shape: f32[1,1,16], index: 6, kind: input, shape index: {}]   ;;  %s3253_s7 = inlined_call_operand.vmem [shape: f32[1,16,16], index: 7, kind: input, shape index: {}]   ;;  %s3254_s8 = inlined_call_operand.hbm [shape: f32[1,1,16], index: 8, kind: input, shape index: {}]   ;;  %s3255_s9 = inlined_call_operand.hbm [shape: f32[1,1,16], index: 9, kind: input, shape index: {}]   ;;  %s3256_s10 = inlined_call_operand.hbm [shape: f32[1,8,16], index: 10, kind: input, shape index: {}]   ;;  %s3257_s11 = inlined_call_operand.hbm [shape: f32[1,1,8], index: 11, kind: input, shape index: {}]   ;;  %s3258_s12 = inlined_call_operand.vmem [shape: f32[1,1,8], index: 12, kind: input, shape index: {}]   ;;  %s3259_s13 = inlined_call_operand.vmem [shape: f32[1,8,8], index: 13, kind: input, shape index: {}]   ;;  %s3260_s14 = inlined_call_operand.vmem [shape: f32[1,1,8], index: 14, kind: input, shape index: {}]   ;;  %s3261_s15 = inlined_call_operand.vmem [shape: f32[1,1,8], index: 15, kind: input, shape index: {}]   ;;  %s3262_s16 = inlined_call_operand.vmem [shape: f32[1,1,8], index: 16, kind: input, shape index: {}]   ;;  %s3263_s17 = inlined_call_operand.<no memory space> [shape: f32[1,1,1], index: 17, kind: input, shape index: {}]   ;;  %s3264_s18 = inlined_call_operand.hbm [shape: f32[2,6,1,6], index: 18, kind: output, shape index: {}]  }
   0x1   :  { %3281 = sst [smem:[#allocation31_spill]] %s3246_s0  ;;  %v23_v0 = vstv %s3263_s17 }
   0x2   :  { %3282 = sst [smem:[#allocation32_spill]] %s3247_s1  ;;  %24 = vst [vmem:[#allocation2] sm:$0x1] %v23_v0 }
   0x3   :  { %3283 = sst [smem:[#allocation33_spill]] %s3248_s2 }
   0x4   :  { %3284 = sst [smem:[#allocation34_spill]] %s3251_s5 }
   0x5   :  { %3285 = sst [smem:[#allocation35_spill]] %s3252_s6 }
   0x6   :  { %3286 = sst [smem:[#allocation36_spill]] %s3254_s8 }
   0x7   :  { %3287 = sst [smem:[#allocation37_spill]] %s3255_s9 }
   0x8   :  { %3288 = sst [smem:[#allocation38_spill]] %s3256_s10 }
   0x9   :  { %3289 = sst [smem:[#allocation39_spill]] %s3258_s12 }
   0xa   :  { %3290 = sst [smem:[#allocation40_spill]] %s3260_s14 }
   0xb   :  { %3291 = sst [smem:[#allocation41_spill]] %s3261_s15 }
   0xc   :  { %3292 = sst [smem:[#allocation42_spill]] %s3262_s16 }
   0xd   :  { %3293 = sst [smem:[#allocation43_spill]] %s3264_s18 }
   0xe   :  { %25 = vsyncpa [#allocation4], 0 }
   0xf   :  { %27 = vsyncpa [#allocation4 + $0x1], 0 }
  0x10   :  { %28 = vsyncpa [#allocation7], 0 }
  0x11   :  { %30 = vsyncpa [#allocation7 + $0x1], 0 }
  0x12   :  { %31 = vsyncpa [#allocation10], 0 }
  0x13   :  { %32 = vsyncpa [#allocation13], 0 }
  0x14   :  { %33 = vsyncpa [#allocation16], 0 }
  0x15   :  { %34 = vsyncpa [#allocation5], 0 }
  0x16   :  { %36 = vsyncpa [#allocation5 + $0x1], 0  ;;  %s2801_s29 = smov 0   ;;  %s2803_s30 = smov 0  }
  0x17   :  { %s2805_s0 = smov 0   ;;  %s2807_s19 = smov 0  }
  0x18 LB: > { %3294 = sst [smem:[#allocation25_spill]] %s2678_s29  ;;  %s2825_s21 = sadd.s32 4294967295, %s2690_s19   ;;  %s2690_s19 = sphi %s2807_s19, %s3334_s19   ;;  %s2686_s0 = sphi %s2805_s0, %s3338_s0   ;;  %s2682_s30 = sphi %s2803_s30, %s3337_s30   ;;  %s2678_s29 = sphi %s2801_s29, %s3336_s29  }
  0x19   : > { %3295 = sst [smem:[#allocation26_spill]] %s2690_s19  ;;  %p2079_p0 = scmp.ge.s32.totalorder %s2690_s19, 1 }
  0x1a   : > { %s3296_s5 = sld [smem:[#allocation34_spill]]  ;;  %p3276_p1 = scmp.eq.s32.totalorder %s2825_s21, 0 }
  0x1b   : > { %p471_p2 = scmp.lt.s32.totalorder %s2690_s19, 3  ;;  %s2692_s2 = smov [#allocation9]  }
  0x1c   : > { %s488_s23 = sshll.u32 %s2692_s2, 4  ;;  %s3298_s8 = sld [smem:[#allocation36_spill]]  ;;  %s489_s23 = int_to_ptr.vmem [resolvable:$true] %s488_s23 }
  0x1d   : > { %p2830_p3 = pnand %p2079_p0, %p471_p2  ;;  %s2693_s28 = smov [#allocation12]  }
  0x1e   : > { %s515_s17 = sshll.u32 %s2693_s28, 4  ;;  %s3300_s10 = sld [smem:[#allocation38_spill]]  ;;  %s516_s17 = int_to_ptr.vmem [resolvable:$true] %s515_s17 }
  0x1f   : > { %p2209_p5 = pneg %p2830_p3  ;;  %s2694_s25 = smov [#allocation15]  }
  0x20   : > { %s486_s20 = sshll.u32 %s3296_s5, 4  ;;  %s539_s5 = sshll.u32 %s2694_s25, 4  ;;  %s487_s20 = int_to_ptr.hbm [resolvable:$true] %s486_s20  ;;  %s540_s5 = int_to_ptr.vmem [resolvable:$true] %s539_s5 }
  0x21   : > { %p2842_p6 = pnand %p2209_p5, %p3276_p1  ;;  %s2078_s28 = sadd.s32 4294967294, %s2690_s19  }
  0x22   : > { %s513_s26 = sshll.u32 %s3298_s8, 4  ;;  %s2857_s1 = sadd.s32 1, %s2690_s19   ;;  %s514_s26 = int_to_ptr.hbm [resolvable:$true] %s513_s26 }
  0x23   : > { %2212 = dma.hbm_to_vmem [thread:$0]  (!%p2842_p6), %s487_s20, 16, %s489_s23, [#allocation10]  }
  0x24   : > { %s537_s24 = sshll.u32 %s3300_s10, 4  ;;  %3301 = sst [smem:[#allocation27_spill]] %s2857_s1  ;;  %s538_s24 = int_to_ptr.hbm [resolvable:$true] %s537_s24 }
  0x25   : > { %2218 = dma.hbm_to_vmem [thread:$0]  (!%p2842_p6), %s514_s26, 16, %s516_s17, [#allocation13]  }
  0x26   : > { %2224 = dma.hbm_to_vmem [thread:$0]  (!%p2842_p6), %s538_s24, 128, %s540_s5, [#allocation16]  }
  0x27   : > { %s49_s2 = sadd.s32 1, %s2686_s0  ;;  %s46_s8 = ssub.s32 %s2690_s19, %s2857_s1 }
  0x28   : > { %p56_p7 = scmp.ne.s32.totalorder %s2686_s0, %s2682_s30  ;;  %p47_p8 = scmp.eq.s32.totalorder %s46_s8, 0 }
  0x29   : > { %p57_p9 = scmp.eq.s32.totalorder %s2690_s19, 0  ;;  %p62_p10 = scmp.ne.s32.totalorder %s2682_s30, %s2678_s29 }
  0x2a   : > { %p458_p11 = scmp.eq.s32.totalorder %s2825_s21, 1  ;;  %p464_p2 = scmp.eq.s32.totalorder %s2078_s28, 1 }
  0x2b   : > { %s2869_s20 = scalar_select %p47_p8, %s2686_s0, %s49_s2  }
  0x2c   : > { %p58_p12 = por %p57_p9, %p56_p7  ;;  %p2873_p13 = por %p3276_p1, %p62_p10 }
  0x2d   : > { %3302 = sst [smem:[#allocation28_spill]] %s2869_s20  ;;  %p2877_p0 = por %p458_p11, %p56_p7 }
  0x2e   : > { %p2248_p5 = scmp.lt.s32.totalorder %s2690_s19, 2  ;;  %s3273_s26 = sand.u32 1, %s2686_s0  }
  0x2f   : > { %s3304_s23 = scalar_select %p2877_p0, 1, 0 }
  0x30   : > { %p2883_p4 = por %p464_p2, %p62_p10  ;;  %s2889_s17 = smul.u32 6, %s3273_s26 }
  0x31   : > { %3305 = sst [smem:[#allocation29_spill]] %s3304_s23  ;;  %s2892_s24 = smul.u32 6, %s2690_s19 }
  0x32   : > { %s3306_s8 = scalar_select %p2883_p4, 1, 0 }
  0x33   : > { %p2894_p8 = pnand %p2248_p5, %p58_p12  ;;  %s608_s28 = sand.u32 1, %s2690_s19  }
  0x34   : > { %3307 = sst [smem:[#allocation30_spill]] %s3306_s8  ;;  %s612_s29 = scalar_lea.vmem [#allocation6], %s2889_s17 }
  0x35   : > { %s3309_s20 = sld [smem:[#allocation33_spill]]  ;;  %s619_s8 = sshll.u32 %s612_s29, 4  ;;  %s620_s8 = int_to_ptr.vmem [resolvable:$true] %s619_s8 }
  0x36   : > { %s3310_s6 = sld [smem:[#allocation35_spill]]  ;;  %s2907_s15 = scalar_lea.sflag [#allocation7], %s608_s28 }
  0x37   : > { %p2432_p9 = pneg %p2894_p8 }
  0x3b   : > { %s616_s1 = scalar_lea.hbm %s3309_s20, %s2892_s24 }
  0x3c   : > { %s617_s23 = sshll.u32 %s616_s1, 4  ;;  %s498_s16 = sshll.u32 %s3310_s6, 4  ;;  %s618_s23 = int_to_ptr.hbm [resolvable:$true] %s617_s23  ;;  %s499_s16 = int_to_ptr.hbm [resolvable:$true] %s498_s16 }
  0x3d   : > { %s2428_s14 = sshra.s32 %s618_s23, 4  ;;  %s2435_s1 = scalar_lea.hbm %s3309_s20, 12  ;;  %s2429_s14 = int_to_ptr.hbm [resolvable:$true] %s2428_s14 }
  0x3e   : > { %s2430_s12 = scalar_lea.hbm %s2429_s14, 6  ;;  %p2436_p12 = scmp.lt.s32.totalorder %s2429_s14, %s3309_s20 }
  0x3f   : > { %p2431_p7 = scmp.ne.s32.totalorder %s2429_s14, %s2430_s12  ;;  %p2437_p2 = scmp.lt.s32.totalorder %s2435_s1, %s2430_s12 }
  0x41   : > { %p2433_p10 = pnand %p2432_p9, %p2431_p7  ;;  %p2438_p5 = por %p2437_p2, %p2436_p12 }
  0x43   : > { %p2434_p11 = pneg %p2433_p10 }
  0x45   : > { %p2439_p1 = pnand %p2438_p5, %p2434_p11 }
  0x47   : > { %2442 = shalt.err (!%p2439_p1)
}
  0x48   : > { %s3277_s18 = smov 16   ;;  %s3279_s26 = smov 1  }
  0x49   : > { %2234 = dma.hbm_to_vmem [thread:$0]  (!%p2894_p8), %s618_s23, 96, %s620_s8, %s2907_s15, %s3277_s18, %s3277_s18, %s3279_s26  }
  0x4a   : > { %s2697_s28 = smov [#allocation11]   ;;  %s3311_s9 = sld [smem:[#allocation37_spill]] }
  0x4b   : > { %s500_s14 = sshll.u32 %s2697_s28, 4  ;;  %s549_s2 = sshll.u32 %s3257_s11, 4  ;;  %s501_s14 = int_to_ptr.vmem [resolvable:$true] %s500_s14  ;;  %s550_s2 = int_to_ptr.hbm [resolvable:$true] %s549_s2 }
  0x4c   : > { %2215 = dma.hbm_to_vmem [thread:$0]  (!%p2842_p6), %s499_s16, 16, %s501_s14, [#allocation10]  }
  0x4d   : > { %s2698_s23 = smov [#allocation14]   ;;  %s2699_s28 = smov [#allocation17]  }
  0x4e   : > { %s527_s8 = sshll.u32 %s2698_s23, 4  ;;  %s551_s12 = sshll.u32 %s2699_s28, 4  ;;  %s528_s8 = int_to_ptr.vmem [resolvable:$true] %s527_s8  ;;  %s552_s12 = int_to_ptr.vmem [resolvable:$true] %s551_s12 }
  0x4f   : > { %2227 = dma.hbm_to_vmem [thread:$0]  (!%p2842_p6), %s550_s2, 16, %s552_s12, [#allocation16]  }
  0x50   : > { %s525_s10 = sshll.u32 %s3311_s9, 4  ;;  %s3312_s16 = sld [smem:[#allocation31_spill]]  ;;  %s526_s10 = int_to_ptr.hbm [resolvable:$true] %s525_s10 }
  0x51   : > { %2221 = dma.hbm_to_vmem [thread:$0]  (!%p2842_p6), %s526_s10, 16, %s528_s8, [#allocation13]  }
  0x52   : > { %s584_s26 = scalar_lea.vmem [#allocation3], %s2889_s17  ;;  %s3313_s23 = sand.u32 1, %s2686_s0  }
  0x53   : > { %s591_s29 = sshll.u32 %s584_s26, 4  ;;  %s581_s6 = scalar_lea.sflag [#allocation4], %s3313_s23  ;;  %s592_s29 = int_to_ptr.vmem [resolvable:$true] %s591_s29 }
  0x56   : > { %s588_s14 = scalar_lea.hbm %s3312_s16, %s2892_s24  ;;  %s2555_s18 = scalar_lea.hbm %s3312_s16, 12 }
  0x57   : > { %s589_s1 = sshll.u32 %s588_s14, 4  ;;  %s590_s1 = int_to_ptr.hbm [resolvable:$true] %s589_s1 }
  0x58   : > { %s2548_s9 = sshra.s32 %s590_s1, 4  ;;  %s2549_s9 = int_to_ptr.hbm [resolvable:$true] %s2548_s9 }
  0x59   : > { %s2550_s10 = scalar_lea.hbm %s2549_s9, 6  ;;  %p2556_p6 = scmp.lt.s32.totalorder %s2549_s9, %s3312_s16 }
  0x5a   : > { %p2551_p1 = scmp.ne.s32.totalorder %s2549_s9, %s2550_s10  ;;  %p2557_p11 = scmp.lt.s32.totalorder %s2555_s18, %s2550_s10 }
  0x5c   : > { %p2553_p7 = pnand %p2551_p1, %p2432_p9  ;;  %p2558_p12 = por %p2557_p11, %p2556_p6 }
  0x5e   : > { %p2554_p10 = pneg %p2553_p7 }
  0x60   : > { %p2559_p2 = pnand %p2558_p12, %p2554_p10 }
  0x62   : > { %2562 = shalt.err (!%p2559_p2)
}
  0x63   : > { %s3314_s26 = smov 1   ;;  %s3315_s12 = smov 16  }
  0x64   : > { %2231 = dma.hbm_to_vmem [thread:$0]  (!%p2894_p8), %s590_s1, 96, %s592_s29, %s581_s6, %s3315_s12, %s3315_s12, %s3314_s26  }
  0x65   : > { %s637_s23 = scalar_lea.hbm %s3249_s3, %s2892_s24  ;;  %s633_s27 = scalar_lea.vmem [#allocation8], %s2889_s17 }
  0x66   : > { %s640_s2 = sshll.u32 %s633_s27, 4  ;;  %s638_s9 = sshll.u32 %s637_s23, 4  ;;  %s641_s2 = int_to_ptr.vmem [resolvable:$true] %s640_s2  ;;  %s639_s9 = int_to_ptr.hbm [resolvable:$true] %s638_s9 }
  0x67   : > { %s2578_s10 = sshra.s32 %s639_s9, 4  ;;  %s2585_s6 = scalar_lea.hbm %s3249_s3, 12  ;;  %s2579_s10 = int_to_ptr.hbm [resolvable:$true] %s2578_s10 }
  0x68   : > { %s2580_s18 = scalar_lea.hbm %s2579_s10, 6  ;;  %p2586_p10 = scmp.lt.s32.totalorder %s2579_s10, %s3249_s3 }
  0x69   : > { %p2581_p5 = scmp.ne.s32.totalorder %s2579_s10, %s2580_s18  ;;  %p2587_p6 = scmp.lt.s32.totalorder %s2585_s6, %s2580_s18 }
  0x6b   : > { %p2583_p1 = pnand %p2581_p5, %p2432_p9  ;;  %p2588_p11 = por %p2587_p6, %p2586_p10 }
  0x6d   : > { %p2584_p7 = pneg %p2583_p1 }
  0x6f   : > { %p2589_p12 = pnand %p2588_p11, %p2584_p7 }
  0x71   : > { %2592 = shalt.err (!%p2589_p12)
}
  0x72   : > { %2237 = dma.hbm_to_vmem [thread:$0]  (!%p2894_p8), %s639_s9, 96, %s641_s2, %s2907_s15, %s3315_s12, %s3315_s12, %s3314_s26  }
  0x73   : > { %652 = sbr.rel (%p2830_p3) target bundleno = 1110 (0x456), region = 92  ;;  %s2982_s17 = sand.u32 (!%p2830_p3), 1, %s2682_s30  }
  0x74   : > { %s2985_s24 = smul.u32 (!%p2830_p3), 6, %s2982_s17  ;;  %s655_s19 = scalar_lea.sflag (!%p2830_p3), [#allocation4], %s2982_s17 }
  0x76   : > { %s2989_s14 = scalar_lea.vmem (!%p2830_p3), [#allocation3], %s2985_s24 }
  0x78   : > { %2653 = dma.done.wait (%p2873_p13), %s655_s19, 96  }
  0x79   : > { %2655 = vsyncadd (%p2873_p13), %s655_s19, 4294967200  ;;  %s664_s15 = sand.u32 1, %s2825_s21   ;;  %s2997_s25 = scalar_lea.vmem [#allocation6], %s2985_s24 }
  0x7a   : > { %s665_s22 = scalar_lea.sflag [#allocation7], %s664_s15 }
  0x7b   : > { %2657 = dma.done.wait (%p2873_p13), %s665_s22, 192  }
  0x7c   : > { %2659 = vsyncadd (%p2873_p13), %s665_s22, 4294967104  ;;  %s3004_s26 = scalar_lea.vmem [#allocation8], %s2985_s24  ;;  %p3316_p3 = scmp.eq.s32.totalorder %s2825_s21, 0 }
  0x7e   : > { %2661 = dma.done.wait (%p3316_p3), [#allocation10], 32   ;;  %p3317_p8 = pmov %p3316_p3 }
  0x7f   : > { %p3318_p9 = pmov %p3316_p3 }
  0x80   : > { %2663 = vsyncadd (%p3317_p8), [#allocation10], 4294967264 }
  0x81   : > { %2665 = dma.done.wait (%p3318_p9), [#allocation13], 32   ;;  %p3319_p2 = pmov %p3316_p3 }
  0x83   : > { %2667 = vsyncadd (%p3319_p2), [#allocation13], 4294967264  ;;  %p3320_p5 = pmov %p3319_p2 }
  0x84   : > { %p3321_p13 = pmov %p3319_p2 }
  0x85   : > { %2669 = dma.done.wait (%p3320_p5), [#allocation16], 144  }
  0x86   : > { %2671 = vsyncadd (%p3321_p13), [#allocation16], 4294967152  ;;  %p776_p1 = scmp.lt.s32.totalorder %s2825_s21, 1  ;;  %vm819_vm0 = vcmask 252928   ;;  %s3322_s2 = sld [smem:[#allocation32_spill]]  ;;  %v818_v1 = vld [vmem:[%s3250_s4 + $0x8] sm:$0xff] }
  0x87   : > { %v817_v2 = vld [vmem:[%s3250_s4] sm:$0xff]  ;;  %2095 = vmatpush.xpose.msk.msra.mxu0 %vm819_vm0, %v818_v1  ;;  %2098 = vmatpush.xpose.msk.msra.mxu1 %vm819_vm0, %v818_v1  ;;  %v1003_v22 = vld [vmem:[%s3253_s7 + $0x8] sm:$0xff]  ;;  %vm1004_vm1 = vcmask 130048   ;;  %vm1368_vm14 = vcmask 64512   ;;  %s3325_s18 = sld [smem:[#allocation41_spill]] }
  0x88   : > { %s777_s5 = scalar_select %p776_p1, %s2825_s21, 1  ;;  %v2300_v4 = vld [vmem:[%s2989_s14] ss:$0 sm:$0xff]  ;;  %2101 = vmatpush.xpose.msk.msra.mxu2 %vm819_vm0, %v818_v1  ;;  %2104 = vmatpush.xpose.msk.msra.mxu3 %vm819_vm0, %v818_v1  ;;  %v2301_v5 = vld [vmem:[%s2989_s14 + $0x1] ss:$0 sm:$0xff]  ;;  %v1187_v56 = vld [vmem:[#allocation15] sm:$0xff] }
  0x89   : > { %v2302_v6 = vld [vmem:[%s2989_s14 + $0x2] ss:$0 sm:$0xff]  ;;  %v2303_v8 = vld [vmem:[%s2989_s14 + $0x3] ss:$0 sm:$0xff]  ;;  %v2304_v11 = vld [vmem:[%s2989_s14 + $0x4] ss:$0 sm:$0xff] }
  0x8a   : > { %s2094_s12 = sshll.u32 %s777_s5, 3  ;;  %v2305_v12 = vld [vmem:[%s2989_s14 + $0x5] ss:$0 sm:$0xff]  ;;  %v2306_v24 = vld [vmem:[#allocation9] ss:$0 sm:$0xff]  ;;  %s3326_s6 = sld [smem:[#allocation42_spill]] }
  0x8b   : > { %2096 = vmatpush.xpose.msk.msra.mxu0 %vm819_vm0, %v817_v2  ;;  %2099 = vmatpush.xpose.msk.msra.mxu1 %vm819_vm0, %v817_v2  ;;  %v1002_v23 = vld [vmem:[%s3253_s7] sm:$0xff]  ;;  %v2308_v57 = vld [vmem:[#allocation12] ss:$0 sm:$0xff]  ;;  %v2309_v58 = vld [vmem:[#allocation14] ss:$0 sm:$0xff]  ;;  %s3327_s29 = sld [smem:[#allocation43_spill]] }
  0x8c   : > { %s779_s9 = scalar_lea.vmem %s3322_s2, %s2094_s12  ;;  %2102 = vmatpush.xpose.msk.msra.mxu2 %vm819_vm0, %v817_v2  ;;  %2105 = vmatpush.xpose.msk.msra.mxu3 %vm819_vm0, %v817_v2  ;;  %v2307_v25 = vld [vmem:[#allocation11] ss:$0 sm:$0xff]  ;;  %s3323_s12 = sld [smem:[#allocation39_spill]] }
  0x8d   : > { %v786_v3 = vld [vmem:[%s779_s9] sm:$0x3f]  ;;  %s3324_s2 = sld [smem:[#allocation40_spill]]  ;;  %s1879_s5 = scalar_lea.sflag [#allocation5], %s2982_s17 }
  0x8e   : > { %v805_v7 = vsub.f32 %v2300_v4, %v786_v3  ;;  %v806_v9 = vsub.f32 %v2301_v5, %v786_v3  ;;  %v807_v10 = vsub.f32 %v2302_v6, %v786_v3  ;;  %v808_v14 = vsub.f32 %v2303_v8, %v786_v3 }
  0x8f   : > { %2107 = vmatpush.xpose.msk.msrb.mxu0 %vm819_vm0, %v818_v1  ;;  %2110 = vmatpush.xpose.msk.msrb.mxu1 %vm819_vm0, %v818_v1  ;;  %v809_v18 = vsub.f32 %v2304_v11, %v786_v3  ;;  %v810_v19 = vsub.f32 %v2305_v12, %v786_v3 }
  0x90   : > { %v811_v13 = vand.u32 2147483647, %v805_v7  ;;  %v812_v15 = vand.u32 2147483647, %v806_v9  ;;  %v813_v16 = vand.u32 2147483647, %v807_v10  ;;  %2113 = vmatpush.xpose.msk.msrb.mxu2 %vm1004_vm1, %v1003_v22  ;;  %2116 = vmatpush.xpose.msk.msrb.mxu3 %vm1004_vm1, %v1003_v22 }
  0x91   : > { %v814_v17 = vand.u32 2147483647, %v808_v14  ;;  %v815_v20 = vand.u32 2147483647, %v809_v18  ;;  %v816_v21 = vand.u32 2147483647, %v810_v19  ;;  %s3328_s1 = smov %s3327_s29 }
  0x92   : > { %2097 = vmatmul.msk.f32.vlgmr.msra.gmra.mxu0 %vm819_vm0, %v811_v13  ;;  %2100 = vmatmul.msk.f32.vlgmr.msra.gmra.mxu1 %vm819_vm0, %v812_v15  ;;  %s2628_s9 = scalar_lea.hbm %s3328_s1, 12 }
  0x93   : > { %2103 = vmatmul.msk.f32.vlgmr.msra.gmra.mxu2 %vm819_vm0, %v813_v16  ;;  %2106 = vmatmul.msk.f32.vlgmr.msra.gmra.mxu3 %vm819_vm0, %v814_v17 }
  0x94   : > { %2108 = vmatpush.xpose.msk.msrb.mxu0 %vm819_vm0, %v817_v2  ;;  %2111 = vmatpush.xpose.msk.msrb.mxu1 %vm819_vm0, %v817_v2 }
  0x95   : > { %2114 = vmatpush.xpose.msk.msrb.mxu2 %vm1004_vm1, %v1002_v23  ;;  %2117 = vmatpush.xpose.msk.msrb.mxu3 %vm1004_vm1, %v1002_v23 }
  0x98   : > { %2119 = vmatpush.xpose.msk.msra.mxu0 %vm1004_vm1, %v1003_v22  ;;  %2122 = vmatpush.xpose.msk.msra.mxu1 %vm1004_vm1, %v1003_v22 }
  0x99   : > { %2125 = vmatpush.xpose.msk.msra.mxu2 %vm1004_vm1, %v1003_v22  ;;  %2128 = vmatpush.xpose.msk.msra.mxu3 %vm1004_vm1, %v1003_v22 }
  0x9a   : > { %2109 = vmatmul.msk.f32.vlgmr.msrb.gmra.mxu0 %vm819_vm0, %v815_v20  ;;  %2112 = vmatmul.msk.f32.vlgmr.msrb.gmra.mxu1 %vm819_vm0, %v816_v21 }
  0x9c   : > { %2120 = vmatpush.xpose.msk.msra.mxu0 %vm1004_vm1, %v1002_v23  ;;  %2123 = vmatpush.xpose.msk.msra.mxu1 %vm1004_vm1, %v1002_v23 }
  0x9d   : > { %2126 = vmatpush.xpose.msk.msra.mxu2 %vm1004_vm1, %v1002_v23  ;;  %2129 = vmatpush.xpose.msk.msra.mxu3 %vm1004_vm1, %v1002_v23 }
  0xa0   : > { %2131 = vmatpush.xpose.msk.msrb.mxu0 %vm1004_vm1, %v1187_v56  ;;  %2133 = vmatpush.xpose.msk.msrb.mxu1 %vm1004_vm1, %v1187_v56 }
 0x10f   : > { %v846_v26 = vpop.f32.mrf.mxu0  ;;  %v869_v27 = vpop.f32.mrf.mxu1 }
 0x110   : > { %v968_v28 = vmul.f32 %v2306_v24, %v846_v26  ;;  %v969_v29 = vmul.f32 %v2306_v24, %v869_v27  ;;  %v2310_v26 = vld [vmem:[#allocation17] ss:$0 sm:$0xff]  ;;  %v2311_v27 = vld [vmem:[%s3323_s12] ss:$0 sm:$0xff] }
 0x112   : > { %v978_v30 = vadd.f32 %v2307_v25, %v968_v28  ;;  %v979_v31 = vadd.f32 %v2307_v25, %v969_v29 }
 0x114   : > { %v990_v32 = vmul.f32 0.01, %v978_v30  ;;  %v991_v33 = vmul.f32 0.01, %v979_v31  ;;  %vm984_vm2 = vcmp.gt.f32.partialorder %v978_v30, 0.0  ;;  %vm985_vm3 = vcmp.gt.f32.partialorder %v979_v31, 0.0 }
 0x116   : > { %v892_v34 = vpop.f32.mrf.mxu2  ;;  %v915_v35 = vpop.f32.mrf.mxu3  ;;  %v996_v36 = vsel %vm984_vm2, %v978_v30, %v990_v32  ;;  %v997_v37 = vsel %vm985_vm3, %v979_v31, %v991_v33 }
 0x117   : > { %v970_v38 = vmul.f32 %v2306_v24, %v892_v34  ;;  %v971_v39 = vmul.f32 %v2306_v24, %v915_v35  ;;  %v938_v40 = vpop.f32.mrf.mxu0  ;;  %v961_v41 = vpop.f32.mrf.mxu1  ;;  %2115 = vmatmul.msk.f32.vlgmr.msrb.gmra.mxu2 %vm1004_vm1, %v996_v36  ;;  %2118 = vmatmul.msk.f32.vlgmr.msrb.gmra.mxu3 %vm1004_vm1, %v997_v37 }
 0x118   : > { %v972_v42 = vmul.f32 %v2306_v24, %v938_v40  ;;  %v973_v43 = vmul.f32 %v2306_v24, %v961_v41  ;;  %2135 = vmatpush.xpose.msk.msrb.mxu2 %vm1004_vm1, %v1187_v56  ;;  %2137 = vmatpush.xpose.msk.msrb.mxu3 %vm1004_vm1, %v1187_v56 }
 0x119   : > { %v980_v44 = vadd.f32 %v2307_v25, %v970_v38  ;;  %v981_v45 = vadd.f32 %v2307_v25, %v971_v39 }
 0x11a   : > { %v982_v46 = vadd.f32 %v2307_v25, %v972_v42  ;;  %v983_v47 = vadd.f32 %v2307_v25, %v973_v43  ;;  %v1367_v25 = vld [vmem:[%s3259_s13] sm:$0xff] }
 0x11b   : > { %vm986_vm4 = vcmp.gt.f32.partialorder %v980_v44, 0.0  ;;  %v992_v48 = vmul.f32 0.01, %v980_v44  ;;  %vm987_vm5 = vcmp.gt.f32.partialorder %v981_v45, 0.0  ;;  %v993_v49 = vmul.f32 0.01, %v981_v45 }
 0x11c   : > { %vm988_vm6 = vcmp.gt.f32.partialorder %v982_v46, 0.0  ;;  %v994_v50 = vmul.f32 0.01, %v982_v46  ;;  %vm989_vm7 = vcmp.gt.f32.partialorder %v983_v47, 0.0  ;;  %v995_v51 = vmul.f32 0.01, %v983_v47 }
 0x11d   : > { %v998_v52 = vsel %vm986_vm4, %v980_v44, %v992_v48  ;;  %v999_v53 = vsel %vm987_vm5, %v981_v45, %v993_v49 }
 0x11e   : > { %2121 = vmatmul.msk.f32.vlgmr.msra.gmra.mxu0 %vm1004_vm1, %v998_v52  ;;  %2124 = vmatmul.msk.f32.vlgmr.msra.gmra.mxu1 %vm1004_vm1, %v999_v53  ;;  %v1000_v54 = vsel %vm988_vm6, %v982_v46, %v994_v50  ;;  %v1001_v55 = vsel %vm989_vm7, %v983_v47, %v995_v51 }
 0x11f   : > { %2127 = vmatmul.msk.f32.vlgmr.msra.gmra.mxu2 %vm1004_vm1, %v1000_v54  ;;  %2130 = vmatmul.msk.f32.vlgmr.msra.gmra.mxu3 %vm1004_vm1, %v1001_v55 }
 0x120   : > { %2139 = vmatpush.xpose.msk.msra.mxu0 %vm1004_vm1, %v1187_v56  ;;  %2141 = vmatpush.xpose.msk.msra.mxu1 %vm1004_vm1, %v1187_v56 }
 0x121   : > { %2143 = vmatpush.xpose.msk.msra.mxu2 %vm1368_vm14, %v1367_v25  ;;  %2145 = vmatpush.xpose.msk.msra.mxu3 %vm1368_vm14, %v1367_v25 }
 0x19a   : > { %v1031_v59 = vpop.f32.mrf.mxu2  ;;  %v1054_v60 = vpop.f32.mrf.mxu3 }
 0x19b   : > { %v1153_v61 = vmul.f32 %v2308_v57, %v1031_v59  ;;  %v1154_v62 = vmul.f32 %v2308_v57, %v1054_v60  ;;  %v1077_v63 = vpop.f32.mrf.mxu0  ;;  %v1100_v0 = vpop.f32.mrf.mxu1  ;;  %v1549_v59 = vld [vmem:[#allocation2] sm:$0x1] }
 0x19c   : > { %v1155_v1 = vmul.f32 %v2308_v57, %v1077_v63  ;;  %v1156_v2 = vmul.f32 %v2308_v57, %v1100_v0  ;;  %v2312_v60 = vld [vmem:[%s3324_s2] ss:$0 sm:$0xff] }
 0x19d   : > { %v1163_v3 = vadd.f32 %v2309_v58, %v1153_v61  ;;  %v1164_v4 = vadd.f32 %v2309_v58, %v1154_v62  ;;  %v2313_v61 = vld [vmem:[%s3325_s18] ss:$0 sm:$0xff] }
 0x19e   : > { %v1165_v5 = vadd.f32 %v2309_v58, %v1155_v1  ;;  %v1166_v6 = vadd.f32 %v2309_v58, %v1156_v2 }
 0x19f   : > { %vm1169_vm8 = vcmp.gt.f32.partialorder %v1163_v3, 0.0  ;;  %v1175_v7 = vmul.f32 0.01, %v1163_v3  ;;  %vm1170_vm9 = vcmp.gt.f32.partialorder %v1164_v4, 0.0  ;;  %v1176_v8 = vmul.f32 0.01, %v1164_v4 }
 0x1a0   : > { %vm1171_vm10 = vcmp.gt.f32.partialorder %v1165_v5, 0.0  ;;  %v1177_v9 = vmul.f32 0.01, %v1165_v5  ;;  %vm1172_vm11 = vcmp.gt.f32.partialorder %v1166_v6, 0.0  ;;  %v1178_v10 = vmul.f32 0.01, %v1166_v6 }
 0x1a1   : > { %v1181_v11 = vsel %vm1169_vm8, %v1163_v3, %v1175_v7  ;;  %v1182_v12 = vsel %vm1170_vm9, %v1164_v4, %v1176_v8 }
 0x1a2   : > { %v1123_v13 = vpop.f32.mrf.mxu2  ;;  %v1146_v14 = vpop.f32.mrf.mxu3  ;;  %2132 = vmatmul.msk.f32.vlgmr.msrb.gmra.mxu0 %vm1004_vm1, %v1181_v11  ;;  %2134 = vmatmul.msk.f32.vlgmr.msrb.gmra.mxu1 %vm1004_vm1, %v1182_v12  ;;  %v1183_v15 = vsel %vm1171_vm10, %v1165_v5, %v1177_v9  ;;  %v1184_v16 = vsel %vm1172_vm11, %v1166_v6, %v1178_v10  ;;  %vm1727_vm11 = vcmask 40960  }
 0x1a3   : > { %v1157_v17 = vmul.f32 %v2308_v57, %v1123_v13  ;;  %v1158_v18 = vmul.f32 %v2308_v57, %v1146_v14  ;;  %2136 = vmatmul.msk.f32.vlgmr.msrb.gmra.mxu2 %vm1004_vm1, %v1183_v15  ;;  %2138 = vmatmul.msk.f32.vlgmr.msrb.gmra.mxu3 %vm1004_vm1, %v1184_v16 }
 0x1a4   : > { %2147 = vmatpush.xpose.msk.msrb.mxu0 %vm1368_vm14, %v1367_v25  ;;  %2149 = vmatpush.xpose.msk.msrb.mxu1 %vm1368_vm14, %v1367_v25 }
 0x1a5   : > { %v1167_v19 = vadd.f32 %v2309_v58, %v1157_v17  ;;  %v1168_v20 = vadd.f32 %v2309_v58, %v1158_v18  ;;  %2151 = vmatpush.xpose.msk.msrb.mxu2 %vm1368_vm14, %v1367_v25  ;;  %2153 = vmatpush.xpose.msk.msrb.mxu3 %vm1368_vm14, %v1367_v25  ;;  %v2700_v58 = vmov 0  }
 0x1a6   : > { %2299 = vset.pattern.permute.xlu0 %v2700_v58 }
 0x1a7   : > { %vm1173_vm12 = vcmp.gt.f32.partialorder %v1167_v19, 0.0  ;;  %v1179_v21 = vmul.f32 0.01, %v1167_v19  ;;  %vm1174_vm13 = vcmp.gt.f32.partialorder %v1168_v20, 0.0  ;;  %v1180_v22 = vmul.f32 0.01, %v1168_v20  ;;  %1552 = vperm.xlu0 %2299, %v1549_v59  }
 0x1a9   : > { %v1185_v23 = vsel %vm1173_vm12, %v1167_v19, %v1179_v21  ;;  %v1186_v24 = vsel %vm1174_vm13, %v1168_v20, %v1180_v22  ;;  %v1548_v20 = vld [vmem:[%s3326_s6] sm:$0x1] }
 0x1aa   : > { %2140 = vmatmul.msk.f32.vlgmr.msra.gmra.mxu0 %vm1004_vm1, %v1185_v23  ;;  %2142 = vmatmul.msk.f32.vlgmr.msra.gmra.mxu1 %vm1004_vm1, %v1186_v24 }
 0x21f   : > { %v1211_v28 = vpop.f32.mrf.mxu0  ;;  %v1234_v29 = vpop.f32.mrf.mxu1 }
 0x220   : > { %v1333_v30 = vmul.f32 %v2310_v26, %v1211_v28  ;;  %v1334_v31 = vmul.f32 %v2310_v26, %v1234_v29  ;;  %v1553_v29 = vpop.permute.xlu0 %1552 }
 0x222   : > { %v1343_v32 = vadd.f32 %v2311_v27, %v1333_v30  ;;  %v1344_v33 = vadd.f32 %v2311_v27, %v1334_v31  ;;  %v1555_v30 = vperm.slane %v1553_v29, 0  ;;  %v1704_v31 = vld [vmem:[%s3004_s26 + $0x1] sm:$0x1] }
 0x224   : > { %vm1349_vm15 = vcmp.gt.f32.partialorder %v1343_v32, 0.0  ;;  %v1355_v34 = vmul.f32 0.01, %v1343_v32  ;;  %vm1350_vm0 = vcmp.gt.f32.partialorder %v1344_v33, 0.0  ;;  %v1356_v35 = vmul.f32 0.01, %v1344_v33 }
 0x226   : > { %v1257_v36 = vpop.f32.mrf.mxu2  ;;  %v1280_v37 = vpop.f32.mrf.mxu3  ;;  %v1361_v38 = vsel %vm1349_vm15, %v1343_v32, %v1355_v34  ;;  %v1362_v39 = vsel %vm1350_vm0, %v1344_v33, %v1356_v35  ;;  %v1703_v32 = vld [vmem:[%s3004_s26] sm:$0x1]  ;;  %v1697_v34 = vld [vmem:[%s2997_s25] sm:$0x1] }
 0x227   : > { %v1335_v40 = vmul.f32 %v2310_v26, %v1257_v36  ;;  %v1336_v41 = vmul.f32 %v2310_v26, %v1280_v37  ;;  %v1303_v42 = vpop.f32.mrf.mxu0  ;;  %v1326_v43 = vpop.f32.mrf.mxu1  ;;  %2144 = vmatmul.msk.f32.vlgmr.msra.gmra.mxu2 %vm1368_vm14, %v1361_v38  ;;  %2146 = vmatmul.msk.f32.vlgmr.msra.gmra.mxu3 %vm1368_vm14, %v1362_v39  ;;  %v1698_v36 = vld [vmem:[%s2997_s25 + $0x1] sm:$0x1]  ;;  %v1716_v39 = vmul.f32 1e+08, %v1704_v31 }
 0x228   : > { %v1337_v44 = vmul.f32 %v2310_v26, %v1303_v42  ;;  %v1338_v45 = vmul.f32 %v2310_v26, %v1326_v43 }
 0x229   : > { %v1345_v46 = vadd.f32 %v2311_v27, %v1335_v40  ;;  %v1346_v47 = vadd.f32 %v2311_v27, %v1336_v41  ;;  %v1715_v40 = vmul.f32 1e+08, %v1703_v32 }
 0x22a   : > { %v1347_v48 = vadd.f32 %v2311_v27, %v1337_v44  ;;  %v1348_v49 = vadd.f32 %v2311_v27, %v1338_v45  ;;  %v1706_v45 = vld [vmem:[%s3004_s26 + $0x3] sm:$0x1] }
 0x22b   : > { %vm1351_vm1 = vcmp.gt.f32.partialorder %v1345_v46, 0.0  ;;  %v1357_v50 = vmul.f32 0.01, %v1345_v46  ;;  %vm1352_vm2 = vcmp.gt.f32.partialorder %v1346_v47, 0.0  ;;  %v1358_v51 = vmul.f32 0.01, %v1346_v47 }
 0x22c   : > { %vm1353_vm3 = vcmp.gt.f32.partialorder %v1347_v48, 0.0  ;;  %v1359_v52 = vmul.f32 0.01, %v1347_v48  ;;  %vm1354_vm4 = vcmp.gt.f32.partialorder %v1348_v49, 0.0  ;;  %v1360_v53 = vmul.f32 0.01, %v1348_v49 }
 0x22d   : > { %v1363_v54 = vsel %vm1351_vm1, %v1345_v46, %v1357_v50  ;;  %v1364_v55 = vsel %vm1352_vm2, %v1346_v47, %v1358_v51  ;;  %v1705_v46 = vld [vmem:[%s3004_s26 + $0x2] sm:$0x1]  ;;  %v1700_v50 = vld [vmem:[%s2997_s25 + $0x3] sm:$0x1] }
 0x22e   : > { %2148 = vmatmul.msk.f32.vlgmr.msrb.gmra.mxu0 %vm1368_vm14, %v1363_v54  ;;  %2150 = vmatmul.msk.f32.vlgmr.msrb.gmra.mxu1 %vm1368_vm14, %v1364_v55  ;;  %v1365_v56 = vsel %vm1353_vm3, %v1347_v48, %v1359_v52  ;;  %v1366_v57 = vsel %vm1354_vm4, %v1348_v49, %v1360_v53  ;;  %v1699_v48 = vld [vmem:[%s2997_s25 + $0x2] sm:$0x1]  ;;  %v1717_v58 = vmul.f32 1e+08, %v1705_v46 }
 0x22f   : > { %2152 = vmatmul.msk.f32.vlgmr.msrb.gmra.mxu2 %vm1368_vm14, %v1365_v56  ;;  %2154 = vmatmul.msk.f32.vlgmr.msrb.gmra.mxu3 %vm1368_vm14, %v1366_v57  ;;  %v1718_v57 = vmul.f32 1e+08, %v1706_v45 }
 0x2aa   : > { %v1392_v62 = vpop.f32.mrf.mxu2  ;;  %v1415_v63 = vpop.f32.mrf.mxu3 }
 0x2ab   : > { %v1514_v0 = vmul.f32 %v2312_v60, %v1392_v62  ;;  %v1515_v1 = vmul.f32 %v2312_v60, %v1415_v63  ;;  %v1438_v2 = vpop.f32.mrf.mxu0  ;;  %v1461_v3 = vpop.f32.mrf.mxu1  ;;  %v1701_v63 = vld [vmem:[%s2997_s25 + $0x4] sm:$0x1] }
 0x2ac   : > { %v1516_v4 = vmul.f32 %v2312_v60, %v1438_v2  ;;  %v1517_v5 = vmul.f32 %v2312_v60, %v1461_v3 }
 0x2ad   : > { %v1524_v6 = vadd.f32 %v2313_v61, %v1514_v0  ;;  %v1525_v7 = vadd.f32 %v2313_v61, %v1515_v1  ;;  %v1707_v0 = vld [vmem:[%s3004_s26 + $0x4] sm:$0x1]  ;;  %v1702_v1 = vld [vmem:[%s2997_s25 + $0x5] sm:$0x1]  ;;  %s3182_s25 = scalar_lea.vmem [#allocation18], %s2985_s24  ;;  %s2176_s24 = smul.u32 6, %s2825_s21 }
 0x2ae   : > { %v1526_v8 = vadd.f32 %v2313_v61, %v1516_v4  ;;  %v1527_v9 = vadd.f32 %v2313_v61, %v1517_v5  ;;  %v1708_v4 = vld [vmem:[%s3004_s26 + $0x5] sm:$0x1]  ;;  %s1890_s14 = sshll.u32 %s3182_s25, 4  ;;  %s1891_s14 = int_to_ptr.vmem [resolvable:$true] %s1890_s14 }
 0x2af   : > { %vm1530_vm5 = vcmp.gt.f32.partialorder %v1524_v6, 0.0  ;;  %v1536_v10 = vmul.f32 0.01, %v1524_v6  ;;  %vm1531_vm6 = vcmp.gt.f32.partialorder %v1525_v7, 0.0  ;;  %v1537_v11 = vmul.f32 0.01, %v1525_v7  ;;  %s1889_s19 = scalar_lea.hbm %s3327_s29, %s2176_s24 }
 0x2b0   : > { %vm1532_vm7 = vcmp.gt.f32.partialorder %v1526_v8, 0.0  ;;  %v1538_v12 = vmul.f32 0.01, %v1526_v8  ;;  %vm1533_vm8 = vcmp.gt.f32.partialorder %v1527_v9, 0.0  ;;  %v1539_v13 = vmul.f32 0.01, %v1527_v9 }
 0x2b1   : > { %v1542_v14 = vsel %vm1530_vm5, %v1524_v6, %v1536_v10  ;;  %v1543_v15 = vsel %vm1531_vm6, %v1525_v7, %v1537_v11  ;;  %v1719_v7 = vmul.f32 1e+08, %v1707_v0  ;;  %v1720_v10 = vmul.f32 1e+08, %v1708_v4  ;;  %s1892_s15 = sshll.u32 %s1889_s19, 4  ;;  %s1893_s15 = int_to_ptr.hbm [resolvable:$true] %s1892_s15 }
 0x2b2   : > { %v1484_v16 = vpop.f32.mrf.mxu2  ;;  %v1507_v17 = vpop.f32.mrf.mxu3  ;;  %2155 = vmatpush.xpose.msk.msra.mxu0 %vm1368_vm14, %v1542_v14  ;;  %2157 = vmatpush.xpose.msk.msra.mxu1 %vm1368_vm14, %v1543_v15  ;;  %v1544_v18 = vsel %vm1532_vm7, %v1526_v8, %v1538_v12  ;;  %v1545_v19 = vsel %vm1533_vm8, %v1527_v9, %v1539_v13  ;;  %s2622_s12 = sshra.s32 %s1893_s15, 4  ;;  %s2623_s12 = int_to_ptr.hbm [resolvable:$true] %s2622_s12 }
 0x2b3   : > { %v1518_v21 = vmul.f32 %v2312_v60, %v1484_v16  ;;  %v1519_v22 = vmul.f32 %v2312_v60, %v1507_v17  ;;  %2159 = vmatpush.xpose.msk.msra.mxu2 %vm1368_vm14, %v1544_v18  ;;  %2161 = vmatpush.xpose.msk.msra.mxu3 %vm1368_vm14, %v1545_v19  ;;  %s2624_s23 = scalar_lea.hbm %s2623_s12, 6  ;;  %p2629_p11 = scmp.lt.s32.totalorder %s2623_s12, %s3328_s1 }
 0x2b4   : > { %p2625_p7 = scmp.ne.s32.totalorder %s2623_s12, %s2624_s23  ;;  %p2630_p12 = scmp.lt.s32.totalorder %s2628_s9, %s2624_s23 }
 0x2b5   : > { %v1528_v23 = vadd.f32 %v2313_v61, %v1518_v21  ;;  %v1529_v24 = vadd.f32 %v2313_v61, %v1519_v22  ;;  %2156 = vmatmul.msk.f32.vlgmr.msra.gmra.mxu0 %vm1368_vm14, %v1548_v20  ;;  %2158 = vmatmul.msk.f32.vlgmr.msra.gmra.mxu1 %vm1368_vm14, %v1548_v20 }
 0x2b6   : > { %2160 = vmatmul.msk.f32.vlgmr.msra.gmra.mxu2 %vm1368_vm14, %v1548_v20  ;;  %2162 = vmatmul.msk.f32.vlgmr.msra.gmra.mxu3 %vm1368_vm14, %v1548_v20  ;;  %p2626_p10 = pnand %p2625_p7, %p2877_p0  ;;  %p2631_p3 = por %p2630_p12, %p2629_p11 }
 0x2b7   : > { %vm1534_vm9 = vcmp.gt.f32.partialorder %v1528_v23, 0.0  ;;  %v1540_v25 = vmul.f32 0.01, %v1528_v23  ;;  %vm1535_vm10 = vcmp.gt.f32.partialorder %v1529_v24, 0.0  ;;  %v1541_v26 = vmul.f32 0.01, %v1529_v24 }
 0x2b8   : > { %p2627_p6 = pneg %p2626_p10 }
 0x2b9   : > { %v1546_v27 = vsel %vm1534_vm9, %v1528_v23, %v1540_v25  ;;  %v1547_v28 = vsel %vm1535_vm10, %v1529_v24, %v1541_v26 }
 0x2ba   : > { %2163 = vmatpush.xpose.msk.msrb.mxu0 %vm1368_vm14, %v1546_v27  ;;  %2165 = vmatpush.xpose.msk.msrb.mxu1 %vm1368_vm14, %v1547_v28  ;;  %p2632_p8 = pnand %p2631_p3, %p2627_p6 }
 0x2bd   : > { %2164 = vmatmul.msk.f32.vlgmr.msrb.gmra.mxu0 %vm1368_vm14, %v1548_v20  ;;  %2166 = vmatmul.msk.f32.vlgmr.msrb.gmra.mxu1 %vm1368_vm14, %v1548_v20 }
 0x332   : > { %v1579_v33 = vpop.f32.mrf.mxu0  ;;  %v1602_v35 = vpop.f32.mrf.mxu1 }
 0x333   : > { %v1580_v37 = vadd.f32 %v1579_v33, %v1555_v30  ;;  %v1603_v38 = vadd.f32 %v1602_v35, %v1555_v30 }
 0x335   : > { %v1709_v41 = vmul.f32 %v1697_v34, %v1580_v37  ;;  %v1710_v42 = vmul.f32 %v1698_v36, %v1603_v38 }
 0x337   : > { %v1722_v43 = vsub.f32 %v1710_v42, %v1716_v39  ;;  %v1721_v44 = vsub.f32 %v1709_v41, %v1715_v40 }
 0x339   : > { %v1625_v47 = vpop.f32.mrf.mxu2  ;;  %v1648_v49 = vpop.f32.mrf.mxu3  ;;  %v1731_v51 = vsel %vm1727_vm11, %v1722_v43, -inf  ;;  %v1728_v52 = vsel %vm1727_vm11, %v1721_v44, -inf }
 0x33a   : > { %v1626_v53 = vadd.f32 %v1625_v47, %v1555_v30  ;;  %v1649_v54 = vadd.f32 %v1648_v49, %v1555_v30  ;;  %1732 = vmax.xlane.f32.xlu1 %v1731_v51  ;;  %v1694_v55 = vpop.f32.mrf.mxu1  ;;  %1729 = vmax.xlane.f32.xlu0 %v1728_v52  ;;  %v1671_v56 = vpop.f32.mrf.mxu0 }
 0x33b   : > { %v1672_v61 = vadd.f32 %v1671_v56, %v1555_v30  ;;  %v1695_v62 = vadd.f32 %v1694_v55, %v1555_v30 }
 0x33c   : > { %v1711_v59 = vmul.f32 %v1699_v48, %v1626_v53  ;;  %v1712_v60 = vmul.f32 %v1700_v50, %v1649_v54 }
 0x33d   : > { %v1713_v5 = vmul.f32 %v1701_v63, %v1672_v61  ;;  %v1714_v8 = vmul.f32 %v1702_v1, %v1695_v62 }
 0x33e   : > { %v1724_v2 = vsub.f32 %v1712_v60, %v1718_v57  ;;  %v1723_v3 = vsub.f32 %v1711_v59, %v1717_v58 }
 0x33f   : > { %v1725_v11 = vsub.f32 %v1713_v5, %v1719_v7  ;;  %v1726_v12 = vsub.f32 %v1714_v8, %v1720_v10 }
 0x340   : > { %v1737_v6 = vsel %vm1727_vm11, %v1724_v2, -inf  ;;  %v1734_v9 = vsel %vm1727_vm11, %v1723_v3, -inf }
 0x341   : > { %1738 = vmax.xlane.f32.xlu2 %v1737_v6  ;;  %v1740_v13 = vsel %vm1727_vm11, %v1725_v11, -inf  ;;  %v1743_v14 = vsel %vm1727_vm11, %v1726_v12, -inf }
 0x342   : > { %1735 = vmax.xlane.f32.xlu1 %v1734_v9 }
 0x349   : > { %1741 = vmax.xlane.f32.xlu2 %v1740_v13 }
 0x34a   : > { %1744 = vmax.xlane.f32.xlu1 %v1743_v14 }
 0x3ad   : > { %v1733_v15 = vpop.xlane.xlu1 %1732  ;;  %v1730_v16 = vpop.xlane.xlu0 %1729 }
 0x3ae   : > { %v1747_v17 = vsub.f32 %v1722_v43, %v1733_v15  ;;  %v1746_v18 = vsub.f32 %v1721_v44, %v1730_v16 }
 0x3b0   : > { %v1754_v19 = vmul.f32 1.442695, %v1747_v17  ;;  %v1752_v20 = vmul.f32 1.442695, %v1746_v18 }
 0x3b2   : > { %2314 = vpow2.f32 %v1754_v19 }
 0x3b3   : > { %2316 = vpow2.f32 %v1752_v20 }
 0x3b4   : > { %v1739_v21 = vpop.xlane.xlu2 %1738 }
 0x3b5   : > { %v1749_v22 = vsub.f32 %v1724_v2, %v1739_v21  ;;  %v1736_v23 = vpop.xlane.xlu1 %1735 }
 0x3b6   : > { %v1748_v24 = vsub.f32 %v1723_v3, %v1736_v23 }
 0x3b7   : > { %v1758_v25 = vmul.f32 1.442695, %v1749_v22 }
 0x3b8   : > { %v3146_v26 = vpop.eup %2314  ;;  %v1756_v27 = vmul.f32 1.442695, %v1748_v24 }
 0x3b9   : > { %v3148_v28 = vpop.eup %2316  ;;  %2318 = vpow2.f32 %v1758_v25  ;;  %v1767_v29 = vsel %vm1727_vm11, %v3146_v26, 0.0 }
 0x3ba   : > { %2320 = vpow2.f32 %v1756_v27  ;;  %1768 = vadd.xlane.f32.xlu1 %v1767_v29  ;;  %v1764_v30 = vsel %vm1727_vm11, %v3148_v28, 0.0 }
 0x3bb   : > { %1765 = vadd.xlane.f32.xlu2 %v1764_v30 }
 0x3bc   : > { %v1742_v31 = vpop.xlane.xlu2 %1741 }
 0x3bd   : > { %v1750_v32 = vsub.f32 %v1725_v11, %v1742_v31  ;;  %v1745_v33 = vpop.xlane.xlu1 %1744 }
 0x3be   : > { %v1751_v34 = vsub.f32 %v1726_v12, %v1745_v33 }
 0x3bf   : > { %v3154_v35 = vpop.eup %2318  ;;  %v1760_v36 = vmul.f32 1.442695, %v1750_v32 }
 0x3c0   : > { %v3156_v37 = vpop.eup %2320  ;;  %v1762_v38 = vmul.f32 1.442695, %v1751_v34  ;;  %v1773_v39 = vsel %vm1727_vm11, %v3154_v35, 0.0 }
 0x3c1   : > { %2322 = vpow2.f32 %v1760_v36  ;;  %v1770_v40 = vsel %vm1727_vm11, %v3156_v37, 0.0 }
 0x3c2   : > { %2324 = vpow2.f32 %v1762_v38  ;;  %1774 = vadd.xlane.f32.xlu1 %v1773_v39 }
 0x3c3   : > { %1771 = vadd.xlane.f32.xlu2 %v1770_v40 }
 0x3c7   : > { %v3162_v41 = vpop.eup %2322 }
 0x3c8   : > { %v3164_v42 = vpop.eup %2324  ;;  %v1776_v44 = vsel %vm1727_vm11, %v3162_v41, 0.0 }
 0x3c9   : > { %v1779_v43 = vsel %vm1727_vm11, %v3164_v42, 0.0 }
 0x3ca   : > { %1780 = vadd.xlane.f32.xlu1 %v1779_v43 }
 0x3cb   : > { %1777 = vadd.xlane.f32.xlu2 %v1776_v44 }
 0x42d   : > { %v1769_v45 = vpop.xlane.xlu1 %1768 }
 0x42e   : > { %2326 = vrcp.f32 %v1769_v45  ;;  %v1766_v46 = vpop.xlane.xlu2 %1765  ;;  %v1808_v54 = vand.u32 2147483648, %v1769_v45  ;;  %v1806_v57 = vand.u32 2147483647, %v1769_v45  ;;  %vm1802_vm14 = vweird.f32 %v1769_v45 }
 0x42f   : > { %2328 = vrcp.f32 %v1766_v46  ;;  %v1793_v58 = vand.u32 2147483648, %v1766_v46  ;;  %v1791_v60 = vand.u32 2147483647, %v1766_v46  ;;  %vm1787_vm0 = vweird.f32 %v1766_v46 }
 0x430   : > { %v1809_v63 = vor.u32 1.1754944e-38, %v1808_v54  ;;  %vm1807_vm1 = vcmp.eq.f32.partialorder %v1806_v57, 8.507059e+37 }
 0x431   : > { %v1794_v3 = vor.u32 1.1754944e-38, %v1793_v58  ;;  %vm1792_vm3 = vcmp.eq.f32.partialorder %v1791_v60, 8.507059e+37 }
 0x434   : > { %v2327_v47 = vpop.eup %2326 }
 0x435   : > { %v2329_v48 = vpop.eup %2328  ;;  %v1798_v49 = vmul.f32 %v2327_v47, %v1769_v45  ;;  %v1775_v50 = vpop.xlane.xlu1 %1774  ;;  %vm1803_vm12 = vweird.f32 %v2327_v47 }
 0x436   : > { %v1783_v51 = vmul.f32 %v2329_v48, %v1766_v46  ;;  %2330 = vrcp.f32 %v1775_v50  ;;  %v3170_v52 = vpop.xlane.xlu2 %1771  ;;  %vm1788_vm13 = vweird.f32 %v2329_v48  ;;  %vm1804_vm15 = vmor %vm1802_vm14, %vm1803_vm12  ;;  %v1836_v14 = vand.u32 2147483647, %v1775_v50 }
 0x437   : > { %v1799_v53 = vsub.f32 1.0, %v1798_v49  ;;  %2332 = vrcp.f32 %v3170_v52  ;;  %vm1789_vm2 = vmor %vm1787_vm0, %vm1788_vm13  ;;  %v1838_v15 = vand.u32 2147483648, %v1775_v50  ;;  %v1823_v18 = vand.u32 2147483648, %v3170_v52 }
 0x438   : > { %v1784_v55 = vsub.f32 1.0, %v1783_v51  ;;  %v1821_v20 = vand.u32 2147483647, %v3170_v52  ;;  %vm1832_vm6 = vweird.f32 %v1775_v50  ;;  %vm1817_vm8 = vweird.f32 %v3170_v52 }
 0x439   : > { %v1800_v56 = vmul.f32 %v2327_v47, %v1799_v53  ;;  %v1839_v22 = vor.u32 1.1754944e-38, %v1838_v15  ;;  %vm1837_vm9 = vcmp.eq.f32.partialorder %v1836_v14, 8.507059e+37 }
 0x43a   : > { %v1785_v59 = vmul.f32 %v2329_v48, %v1784_v55  ;;  %vm1822_vm12 = vcmp.eq.f32.partialorder %v1821_v20, 8.507059e+37 }
 0x43b   : > { %v1801_v61 = vadd.f32 %v2327_v47, %v1800_v56 }
 0x43c   : > { %v2331_v62 = vpop.eup %2330  ;;  %v1786_v0 = vadd.f32 %v2329_v48, %v1785_v59 }
 0x43d   : > { %v2333_v1 = vpop.eup %2332  ;;  %v1805_v2 = vsel %vm1804_vm15, %v2327_v47, %v1801_v61  ;;  %v1828_v4 = vmul.f32 %v2331_v62, %v1775_v50  ;;  %v3173_v5 = vpop.xlane.xlu1 %1780  ;;  %vm1833_vm4 = vweird.f32 %v2331_v62 }
 0x43e   : > { %v1810_v6 = vsel %vm1807_vm1, %v1809_v63, %v1805_v2  ;;  %v1790_v7 = vsel %vm1789_vm2, %v2329_v48, %v1786_v0  ;;  %v1813_v8 = vmul.f32 %v2333_v1, %v3170_v52  ;;  %v3176_v9 = vpop.xlane.xlu2 %1777  ;;  %2334 = vrcp.f32 %v3173_v5  ;;  %vm1834_vm7 = vmor %vm1832_vm6, %vm1833_vm4 }
 0x43f   : > { %v1811_v10 = vmul.f32 %v3146_v26, %v1810_v6  ;;  %v1795_v11 = vsel %vm1792_vm3, %v1794_v3, %v1790_v7  ;;  %v1829_v12 = vsub.f32 1.0, %v1828_v4  ;;  %2336 = vrcp.f32 %v3176_v9 }
 0x440   : > { %v1796_v13 = vmul.f32 %v3148_v28, %v1795_v11  ;;  %v1814_v16 = vsub.f32 1.0, %v1813_v8  ;;  %vm1818_vm5 = vweird.f32 %v2333_v1  ;;  %v1824_v26 = vor.u32 1.1754944e-38, %v1823_v18 }
 0x441   : > { %1873 = vst.msk [vmem:[%s3182_s25 + $0x1] sm:$0x1] %vm1727_vm11, %v1811_v10  ;;  %v1830_v17 = vmul.f32 %v2331_v62, %v1829_v12  ;;  %vm1819_vm10 = vmor %vm1817_vm8, %vm1818_vm5  ;;  %v1868_v38 = vand.u32 2147483648, %v3173_v5  ;;  %v1866_v40 = vand.u32 2147483647, %v3173_v5  ;;  %vm1862_vm14 = vweird.f32 %v3173_v5 }
 0x442   : > { %1872 = vst.msk [vmem:[%s3182_s25] sm:$0x1] %vm1727_vm11, %v1796_v13  ;;  %v1815_v19 = vmul.f32 %v2333_v1, %v1814_v16  ;;  %v1851_v45 = vand.u32 2147483647, %v3176_v9  ;;  %vm1847_vm2 = vweird.f32 %v3176_v9 }
 0x443   : > { %v1831_v21 = vadd.f32 %v2331_v62, %v1830_v17  ;;  %v1869_v46 = vor.u32 1.1754944e-38, %v1868_v38  ;;  %vm1867_vm1 = vcmp.eq.f32.partialorder %v1866_v40, 8.507059e+37 }
 0x444   : > { %v1816_v23 = vadd.f32 %v2333_v1, %v1815_v19  ;;  %v2335_v24 = vpop.eup %2334  ;;  %vm1852_vm4 = vcmp.eq.f32.partialorder %v1851_v45, 8.507059e+37 }
 0x445   : > { %v1835_v25 = vsel %vm1834_vm7, %v2331_v62, %v1831_v21  ;;  %v1858_v29 = vmul.f32 %v2335_v24, %v3173_v5  ;;  %v2337_v30 = vpop.eup %2336  ;;  %vm1863_vm13 = vweird.f32 %v2335_v24 }
 0x446   : > { %v1840_v27 = vsel %vm1837_vm9, %v1839_v22, %v1835_v25  ;;  %v1820_v28 = vsel %vm1819_vm10, %v2333_v1, %v1816_v23  ;;  %v1843_v36 = vmul.f32 %v2337_v30, %v3176_v9  ;;  %vm1848_vm15 = vweird.f32 %v2337_v30  ;;  %vm1864_vm0 = vmor %vm1862_vm14, %vm1863_vm13 }
 0x447   : > { %v1841_v31 = vmul.f32 %v3154_v35, %v1840_v27  ;;  %v1825_v32 = vsel %vm1822_vm12, %v1824_v26, %v1820_v28  ;;  %v1859_v34 = vsub.f32 1.0, %v1858_v29  ;;  %v1853_v35 = vand.u32 2147483648, %v3176_v9  ;;  %vm1849_vm3 = vmor %vm1847_vm2, %vm1848_vm15 }
 0x448   : > { %v1826_v33 = vmul.f32 %v3156_v37, %v1825_v32  ;;  %v1844_v43 = vsub.f32 1.0, %v1843_v36 }
 0x449   : > { %1875 = vst.msk [vmem:[%s3182_s25 + $0x3] sm:$0x1] %vm1727_vm11, %v1841_v31  ;;  %v1860_v39 = vmul.f32 %v2335_v24, %v1859_v34  ;;  %v1854_v50 = vor.u32 1.1754944e-38, %v1853_v35 }
 0x44a   : > { %1874 = vst.msk [vmem:[%s3182_s25 + $0x2] sm:$0x1] %vm1727_vm11, %v1826_v33  ;;  %v1845_v44 = vmul.f32 %v2337_v30, %v1844_v43 }
 0x44b   : > { %v1861_v37 = vadd.f32 %v2335_v24, %v1860_v39 }
 0x44c   : > { %v1846_v48 = vadd.f32 %v2337_v30, %v1845_v44 }
 0x44d   : > { %v1865_v47 = vsel %vm1864_vm0, %v2335_v24, %v1861_v37 }
 0x44e   : > { %v1870_v49 = vsel %vm1867_vm1, %v1869_v46, %v1865_v47  ;;  %v1850_v52 = vsel %vm1849_vm3, %v2337_v30, %v1846_v48 }
 0x44f   : > { %v1871_v51 = vmul.f32 %v3164_v42, %v1870_v49  ;;  %v1855_v53 = vsel %vm1852_vm4, %v1854_v50, %v1850_v52 }
 0x450   : > { %v1856_v54 = vmul.f32 %v3162_v41, %v1855_v53 }
 0x451   : > { %1877 = vst.msk [vmem:[%s3182_s25 + $0x5] sm:$0x1] %vm1727_vm11, %v1871_v51 }
 0x452   : > { %1876 = vst.msk [vmem:[%s3182_s25 + $0x4] sm:$0x1] %vm1727_vm11, %v1856_v54 }
 0x453   : > { %2635 = shalt.err (!%p2632_p8)
}
 0x454   : > { %s2701_s17 = smov 16   ;;  %s2702_s8 = smov 1  }
 0x455   : > { %2207 = dma.vmem_to_hbm [thread:$0]  (%p2877_p0), %s1891_s14, 96, %s1893_s15, %s1879_s5, %s2701_s17, %s2701_s17, %s2702_s8  }
 0x456 PF: > { %s3330_s28 = sld [smem:[#allocation25_spill]] }
 0x457   : > { %s3332_s25 = sld [smem:[#allocation26_spill]] }
 0x45c   : > { %s1907_s24 = sand.u32 1, %s3330_s28  }
 0x45d   : > { %p3333_p9 = scmp.ge.s32.totalorder %s3332_s25, 2  ;;  %s1908_s21 = scalar_lea.sflag [#allocation5], %s1907_s24 }
 0x45f   : > { %p2239_p2 = pnand %p3333_p9, %p2883_p4 }
 0x461   : > { %p2240_p5 = pneg %p2239_p2 }
 0x463   : > { %2673 = dma.done.wait (%p2240_p5), %s1908_s21, 96  }
 0x464   : > { %2675 = vsyncadd (%p2240_p5), %s1908_s21, 4294967200  ;;  %s3334_s19 = sld [smem:[#allocation27_spill]]  ;;  %s3336_s29 = smov %s2682_s30 }
 0x465   : > { %s3335_s26 = sld [smem:[#allocation28_spill]]  ;;  %s3337_s30 = smov %s2686_s0 }
 0x46a   : > { %p39_p13 = scmp.ge.s32.totalorder %s3334_s19, 4  }
 0x46b   : > { %s3338_s0 = smov %s3335_s26 }
 0x46c   :  { %41 = sbr.rel (!%p39_p13) target bundleno = 24 (0x18), region = 188 }
 0x471   :  { %1914 = vsyncpa [#allocation4], 1 }
 0x472   :  { %1916 = vsyncpa [#allocation4 + $0x1], 1 }
 0x473   :  { %1917 = vsyncpa [#allocation7], 1 }
 0x474   :  { %1919 = vsyncpa [#allocation7 + $0x1], 1 }
 0x475   :  { %1920 = vsyncpa [#allocation10], 1 }
 0x476   :  { %1921 = vsyncpa [#allocation13], 1 }
 0x477   :  { %1922 = vsyncpa [#allocation16], 1 }
 0x478   :  { %1923 = vsyncpa [#allocation5], 1 }
 0x479   :  { %1925 = vsyncpa [#allocation5 + $0x1], 1 }

</bundles_post_ra>
